<compile_context>
chip_gen: v7x
topology: tpu7x:2x2x1
jax: 0.10.0
libtpu: 0.0.40
codegen_flags: <defaults>
</compile_context>

<pallas_src>
import jax
import jax.numpy as jnp
from jax.experimental import pallas as pl
from jax.experimental.pallas import tpu as pltpu

NUM_GROUPS = 32
EPS = 1e-6


def attn_block_kernel(x_ref, gamma_ref, beta_ref, m_ref, mt_ref,
                      wqkv_ref, bqkv_ref, wp_ref, bp_ref, o_ref):
    # x_ref block: (Bblk, W, C), channels-last.
    x = x_ref[...].astype(jnp.float32)                       # (Bb, W, C)
    bb, w, c = x.shape
    g = m_ref.shape[1]
    inv_n = jnp.float32(1.0 / (w * (c // g)))                 # 1 / (W * C_per_group)

    # ---- GroupNorm(32, eps=1e-6, affine); stats in f32 -------------------
    s1 = jnp.sum(x, axis=1)                                   # (Bb, C) per-batch channel sums
    s2 = jnp.sum(x * x, axis=1)                               # (Bb, C)
    ss = jnp.concatenate([s1, s2], axis=0)                    # (2Bb, C)  -> one fold matmul
    gg = jnp.dot(ss, m_ref[...], preferred_element_type=jnp.float32) * inv_n   # (2Bb, G)
    mean_g = gg[:bb]                                          # E[x]   per (b, group)
    ex2_g = gg[bb:]                                           # E[x^2] per (b, group)
    var_g = jnp.maximum(ex2_g - mean_g * mean_g, 0.0)         # clamp (cancellation safety)
    inv_g = jax.lax.rsqrt(var_g + EPS)
    mi = jnp.concatenate([mean_g, inv_g], axis=0)             # (2Bb, G) -> one broadcast matmul
    mic = jnp.dot(mi, mt_ref[...], preferred_element_type=jnp.float32)          # (2Bb, C)
    mean_c = mic[:bb]
    inv_c = mic[bb:]
    a_c = inv_c * gamma_ref[...]                              # (Bb, C)
    d_c = beta_ref[...] - mean_c * a_c                        # (Bb, C)
    h = x * a_c[:, None, :] + d_c[:, None, :]                 # (Bb, W, C), f32

    # ---- fused q/k/v projection on the flattened (Bb*W, C) slab ----------
    r = bb * w
    h2 = h.reshape(r, c).astype(jnp.bfloat16)                 # bf16 MXU inputs, f32 accum
    qkv = jnp.dot(h2, wqkv_ref[...], preferred_element_type=jnp.float32)
    qkv = qkv + bqkv_ref[...]                                 # (R, 3C) f32
    qkv = qkv.reshape(bb, w, 3 * c)
    q = qkv[:, :, :c].astype(jnp.bfloat16)                    # C^-0.5 already folded into wq/bq
    k = qkv[:, :, c:2 * c].astype(jnp.bfloat16)
    v = qkv[:, :, 2 * c:].astype(jnp.bfloat16)

    # ---- attention over the spatial axis (softmax kept in f32) ------------
    logits = jnp.einsum("bqc,bkc->bqk", q, k,
                        preferred_element_type=jnp.float32)   # (Bb, W, W)
    logits = logits - jnp.max(logits, axis=-1, keepdims=True)
    p = jnp.exp(logits)
    p = p * pl.reciprocal(jnp.sum(p, axis=-1, keepdims=True), approx=True)
    ctx = jnp.einsum("bqk,bkc->bqc", p.astype(jnp.bfloat16), v,
                     preferred_element_type=jnp.float32)      # (Bb, W, C)

    # ---- output projection + residual --------------------------------------
    proj = jnp.dot(ctx.reshape(r, c).astype(jnp.bfloat16), wp_ref[...],
                   preferred_element_type=jnp.float32) + bp_ref[...]
    o_ref[...] = (x + proj.reshape(bb, w, c)).astype(o_ref.dtype)


def _pick_block_batch(batch, width):
    """Largest divisor of `batch` giving ~128 slab rows, keeping >=2 grid steps."""
    target = max(1, 128 // max(width, 1))
    bblk = 1
    for cand in range(1, min(batch, target) + 1):
        if batch % cand == 0:
            bblk = cand
    if bblk == batch and batch > 1:      # keep >=2 parallel steps (megacore / v7x 2 TCs)
        for cand in range(bblk - 1, 0, -1):
            if batch % cand == 0:
                bblk = cand
                break
    return bblk


def attn_block_pallas_nwc(x_nwc, params):
    """Core entry point. x_nwc: (B, W, C) float32, channels-last (no layout passes)."""
    B, W, C = x_nwc.shape
    G = NUM_GROUPS
    assert C % G == 0, "GroupNorm(32) requires channels divisible by 32"

    bblk = _pick_block_batch(B, W)
    grid = (B // bblk,)

    scale = jnp.float32(C) ** -0.5
    gamma = params["gamma"].reshape(1, C).astype(jnp.float32)
    beta = params["beta"].reshape(1, C).astype(jnp.float32)

    # Group membership matrices (channel <-> group), f32 so the stats fold is exact.
    ch_group = jnp.arange(C) // (C // G)
    m = (ch_group[:, None] == jnp.arange(G)[None, :]).astype(jnp.float32)   # (C, G)
    mt = m.T                                                                # (G, C)

    # 1x1 Conv1d weights are (C_out, C_in, 1); fuse q/k/v as one (C_in, 3*C_out)
    # matrix with the attention scale folded into the q slice (and its bias).
    wq = params["wq"][:, :, 0].T * scale
    wk = params["wk"][:, :, 0].T
    wv = params["wv"][:, :, 0].T
    wqkv = jnp.concatenate([wq, wk, wv], axis=1).astype(jnp.bfloat16)        # (C, 3C)
    bqkv = jnp.concatenate(
        [params["bq"] * scale, params["bk"], params["bv"]]).reshape(1, 3 * C).astype(jnp.float32)
    wp = params["wp"][:, :, 0].T.astype(jnp.bfloat16)                        # (C, C)
    bp = params["bp"].reshape(1, C).astype(jnp.float32)

    full = lambda shape: pl.BlockSpec(shape, lambda i: (0,) * len(shape))

    return pl.pallas_call(
        attn_block_kernel,
        out_shape=jax.ShapeDtypeStruct((B, W, C), x_nwc.dtype),
        grid_spec=pltpu.PrefetchScalarGridSpec(
            num_scalar_prefetch=0,
            grid=grid,
            in_specs=[
                pl.BlockSpec((bblk, W, C), lambda i: (i, 0, 0)),   # x
                full((1, C)), full((1, C)),                        # gamma, beta
                full((C, G)), full((G, C)),                        # M, M^T
                full((C, 3 * C)), full((1, 3 * C)),                # fused wqkv, bqkv
                full((C, C)), full((1, C)),                        # wp, bp
            ],
            out_specs=pl.BlockSpec((bblk, W, C), lambda i: (i, 0, 0)),
        ),
        compiler_params=pltpu.CompilerParams(
            dimension_semantics=("parallel",)),
    )(x_nwc, gamma, beta, m, mt, wqkv, bqkv, wp, bp)


def attn_block_pallas(x_ncw, params):
    """NCW adapter matching the PyTorch Conv1d layout: x_ncw (B, C, W)."""
    x_nwc = jnp.transpose(x_ncw, (0, 2, 1))          # (B, W, C)
    out_nwc = attn_block_pallas_nwc(x_nwc, params)
    return jnp.transpose(out_nwc, (0, 2, 1))          # back to (B, C, W)


def attn_block_reference(x_ncw, params):
    """Pure-JAX f32 reference mirroring the PyTorch forward."""
    B, C, W = x_ncw.shape
    G = NUM_GROUPS
    cg = C // G
    x = x_ncw.astype(jnp.float32)

    xr = x.reshape(B, G, cg, W)
    mean = xr.mean(axis=(2, 3), keepdims=True)
    var = xr.var(axis=(2, 3), keepdims=True)
    h = ((xr - mean) / jnp.sqrt(var + EPS)).reshape(B, C, W)
    h = h * params["gamma"][None, :, None] + params["beta"][None, :, None]

    def conv1x1(h_, w_, b_):
        return jnp.einsum("oc,bcw->bow", w_[:, :, 0], h_) + b_[None, :, None]

    q = conv1x1(h, params["wq"], params["bq"])
    k = conv1x1(h, params["wk"], params["bk"])
    v = conv1x1(h, params["wv"], params["bv"])

    qt = jnp.transpose(q, (0, 2, 1))                       # (B, W, C)
    w_ = jnp.einsum("bic,bcj->bij", qt, k) * (C ** -0.5)   # (B, W, W)
    w_ = jax.nn.softmax(w_, axis=2)
    h_ = jnp.einsum("bcj,bij->bci", v, w_)                 # (B, C, W)
    h_ = conv1x1(h_, params["wp"], params["bp"])
    return x + h_


def make_params(key, C):
    ks = jax.random.split(key, 10)
    s = 0.1
    return {
        "gamma": 1.0 + s * jax.random.normal(ks[0], (C,), jnp.float32),
        "beta": s * jax.random.normal(ks[1], (C,), jnp.float32),
        "wq": s * jax.random.normal(ks[2], (C, C, 1), jnp.float32),
        "bq": s * jax.random.normal(ks[3], (C,), jnp.float32),
        "wk": s * jax.random.normal(ks[4], (C, C, 1), jnp.float32),
        "bk": s * jax.random.normal(ks[5], (C,), jnp.float32),
        "wv": s * jax.random.normal(ks[6], (C, C, 1), jnp.float32),
        "bv": s * jax.random.normal(ks[7], (C,), jnp.float32),
        "wp": s * jax.random.normal(ks[8], (C, C, 1), jnp.float32),
        "bp": s * jax.random.normal(ks[9], (C,), jnp.float32),
    }


if __name__ == "__main__":
    # C must be divisible by 32 (GroupNorm groups); B=16 gives Bblk=8 -> 2 parallel
    # grid steps with 128-row projection slabs.
    B, C, W = 16, 64, 16
    key = jax.random.PRNGKey(0)
    kx, kp = jax.random.split(key)
    x = jax.random.normal(kx, (B, C, W), jnp.float32)
    params = make_params(kp, C)

    out = jax.block_until_ready(attn_block_pallas(x, params))
    ref = jax.block_until_ready(attn_block_reference(x, params))

    assert out.shape == (B, C, W)
    # bf16 MXU inputs (f32 accumulation) introduce ~1e-2 relative error vs the f32 reference.
    max_err = float(jnp.max(jnp.abs(out - ref)))
    if not jnp.allclose(out, ref, atol=3e-2, rtol=3e-2):
        raise AssertionError(f"Pallas kernel mismatch vs reference (max abs err {max_err:.4e})")
    print("KERNEL_OK")
</pallas_src>

<mosaic_0001>
module attributes {stable_mosaic.version = 11 : i64} {
  func.func @attn_block_kernel(%arg0: i32, %arg1: memref<8x16x64xf32, #tpu.memory_space<vmem>>, %arg2: memref<1x64xf32, #tpu.memory_space<vmem>>, %arg3: memref<1x64xf32, #tpu.memory_space<vmem>>, %arg4: memref<64x32xf32, #tpu.memory_space<vmem>>, %arg5: memref<32x64xf32, #tpu.memory_space<vmem>>, %arg6: memref<64x192xbf16, #tpu.memory_space<vmem>>, %arg7: memref<1x192xf32, #tpu.memory_space<vmem>>, %arg8: memref<64x64xbf16, #tpu.memory_space<vmem>>, %arg9: memref<1x64xf32, #tpu.memory_space<vmem>>, %arg10: memref<8x16x64xf32, #tpu.memory_space<vmem>>) attributes {dimension_semantics = [#tpu.dimension_semantics<parallel>], iteration_bounds = array<i64: 2>, scalar_prefetch = 0 : i64, scratch_operands = 0 : i64, tpu.core_type = #tpu.core_type<tc>, window_params = [{transform_indices = @transform_0, window_bounds = array<i64: 8, 16, 64>}, {pipeline_mode = #tpu.pipeline_mode<synchronous>, transform_indices = @transform_1, window_bounds = array<i64: 1, 64>}, {pipeline_mode = #tpu.pipeline_mode<synchronous>, transform_indices = @transform_2, window_bounds = array<i64: 1, 64>}, {pipeline_mode = #tpu.pipeline_mode<synchronous>, transform_indices = @transform_3, window_bounds = array<i64: 64, 32>}, {pipeline_mode = #tpu.pipeline_mode<synchronous>, transform_indices = @transform_4, window_bounds = array<i64: 32, 64>}, {pipeline_mode = #tpu.pipeline_mode<synchronous>, transform_indices = @transform_5, window_bounds = array<i64: 64, 192>}, {pipeline_mode = #tpu.pipeline_mode<synchronous>, transform_indices = @transform_6, window_bounds = array<i64: 1, 192>}, {pipeline_mode = #tpu.pipeline_mode<synchronous>, transform_indices = @transform_7, window_bounds = array<i64: 64, 64>}, {pipeline_mode = #tpu.pipeline_mode<synchronous>, transform_indices = @transform_8, window_bounds = array<i64: 1, 64>}, {transform_indices = @transform_9, window_bounds = array<i64: 8, 16, 64>}]} {
    %c0 = arith.constant 0 : index
    %c0_0 = arith.constant 0 : index
    %c0_1 = arith.constant 0 : index
    %0 = vector.load %arg1[%c0, %c0_0, %c0_1] : memref<8x16x64xf32, #tpu.memory_space<vmem>>, vector<8x16x64xf32>
    %cst = arith.constant dense<0.000000e+00> : vector<8x64xf32>
    %1 = vector.multi_reduction <add>, %0, %cst [1] : vector<8x16x64xf32> to vector<8x64xf32>
    %2 = arith.mulf %0, %0 : vector<8x16x64xf32>
    %cst_2 = arith.constant dense<0.000000e+00> : vector<8x64xf32>
    %3 = vector.multi_reduction <add>, %2, %cst_2 [1] : vector<8x16x64xf32> to vector<8x64xf32>
    %4 = tpu.concatenate %1, %3 in 0 : vector<8x64xf32>, vector<8x64xf32> -> vector<16x64xf32>
    %c0_3 = arith.constant 0 : index
    %c0_4 = arith.constant 0 : index
    %5 = vector.load %arg4[%c0_3, %c0_4] : memref<64x32xf32, #tpu.memory_space<vmem>>, vector<64x32xf32>
    %cst_5 = arith.constant dense<0.000000e+00> : vector<16x32xf32>
    %6 = tpu.matmul %4, %5, %cst_5 {dimension_numbers = #tpu.dot_dimension_numbers<[1], [0], [0], [1], [0, 0, 1, 1], [], []>} : vector<16x64xf32>, vector<64x32xf32>, vector<16x32xf32> -> vector<16x32xf32>
    %cst_6 = arith.constant 3.125000e-02 : f32
    %7 = vector.broadcast %cst_6 : f32 to vector<16x32xf32>
    %8 = arith.mulf %6, %7 : vector<16x32xf32>
    %9 = vector.extract_strided_slice %8 {offsets = [0, 0], sizes = [8, 32], strides = [1, 1]} : vector<16x32xf32> to vector<8x32xf32>
    %10 = vector.extract_strided_slice %8 {offsets = [8, 0], sizes = [8, 32], strides = [1, 1]} : vector<16x32xf32> to vector<8x32xf32>
    %11 = arith.mulf %9, %9 : vector<8x32xf32>
    %12 = arith.subf %10, %11 : vector<8x32xf32>
    %cst_7 = arith.constant 0.000000e+00 : f32
    %13 = vector.broadcast %cst_7 : f32 to vector<8x32xf32>
    %14 = arith.maximumf %12, %13 : vector<8x32xf32>
    %cst_8 = arith.constant 9.99999997E-7 : f32
    %15 = vector.broadcast %cst_8 : f32 to vector<8x32xf32>
    %16 = arith.addf %14, %15 : vector<8x32xf32>
    %17 = math.rsqrt %16 : vector<8x32xf32>
    %18 = tpu.concatenate %9, %17 in 0 : vector<8x32xf32>, vector<8x32xf32> -> vector<16x32xf32>
    %c0_9 = arith.constant 0 : index
    %c0_10 = arith.constant 0 : index
    %19 = vector.load %arg5[%c0_9, %c0_10] : memref<32x64xf32, #tpu.memory_space<vmem>>, vector<32x64xf32>
    %cst_11 = arith.constant dense<0.000000e+00> : vector<16x64xf32>
    %20 = tpu.matmul %18, %19, %cst_11 {dimension_numbers = #tpu.dot_dimension_numbers<[1], [0], [0], [1], [0, 0, 1, 1], [], []>} : vector<16x32xf32>, vector<32x64xf32>, vector<16x64xf32> -> vector<16x64xf32>
    %21 = vector.extract_strided_slice %20 {offsets = [0, 0], sizes = [8, 64], strides = [1, 1]} : vector<16x64xf32> to vector<8x64xf32>
    %22 = vector.extract_strided_slice %20 {offsets = [8, 0], sizes = [8, 64], strides = [1, 1]} : vector<16x64xf32> to vector<8x64xf32>
    %c0_12 = arith.constant 0 : index
    %c0_13 = arith.constant 0 : index
    %23 = vector.load %arg2[%c0_12, %c0_13] : memref<1x64xf32, #tpu.memory_space<vmem>>, vector<1x64xf32>
    %24 = vector.broadcast %23 : vector<1x64xf32> to vector<8x64xf32>
    %25 = arith.mulf %22, %24 : vector<8x64xf32>
    %c0_14 = arith.constant 0 : index
    %c0_15 = arith.constant 0 : index
    %26 = vector.load %arg3[%c0_14, %c0_15] : memref<1x64xf32, #tpu.memory_space<vmem>>, vector<1x64xf32>
    %27 = arith.mulf %21, %25 : vector<8x64xf32>
    %28 = vector.broadcast %26 : vector<1x64xf32> to vector<8x64xf32>
    %29 = arith.subf %28, %27 : vector<8x64xf32>
    %30 = vector.shape_cast %25 : vector<8x64xf32> to vector<8x1x64xf32>
    %31 = vector.broadcast %30 : vector<8x1x64xf32> to vector<8x16x64xf32>
    %32 = arith.mulf %0, %31 : vector<8x16x64xf32>
    %33 = vector.shape_cast %29 : vector<8x64xf32> to vector<8x1x64xf32>
    %34 = vector.broadcast %33 : vector<8x1x64xf32> to vector<8x16x64xf32>
    %35 = arith.addf %32, %34 : vector<8x16x64xf32>
    %36 = vector.shape_cast %35 : vector<8x16x64xf32> to vector<128x64xf32>
    %37 = arith.truncf %36 : vector<128x64xf32> to vector<128x64xbf16>
    %c0_16 = arith.constant 0 : index
    %c0_17 = arith.constant 0 : index
    %38 = vector.load %arg6[%c0_16, %c0_17] : memref<64x192xbf16, #tpu.memory_space<vmem>>, vector<64x192xbf16>
    %cst_18 = arith.constant dense<0.000000e+00> : vector<128x192xf32>
    %39 = tpu.matmul %37, %38, %cst_18 {dimension_numbers = #tpu.dot_dimension_numbers<[1], [0], [0], [1], [0, 0, 1, 1], [], []>} : vector<128x64xbf16>, vector<64x192xbf16>, vector<128x192xf32> -> vector<128x192xf32>
    %c0_19 = arith.constant 0 : index
    %c0_20 = arith.constant 0 : index
    %40 = vector.load %arg7[%c0_19, %c0_20] : memref<1x192xf32, #tpu.memory_space<vmem>>, vector<1x192xf32>
    %41 = vector.broadcast %40 : vector<1x192xf32> to vector<128x192xf32>
    %42 = arith.addf %39, %41 : vector<128x192xf32>
    %43 = vector.shape_cast %42 : vector<128x192xf32> to vector<8x16x192xf32>
    %44 = vector.extract_strided_slice %43 {offsets = [0, 0, 0], sizes = [8, 16, 64], strides = [1, 1, 1]} : vector<8x16x192xf32> to vector<8x16x64xf32>
    %45 = arith.truncf %44 : vector<8x16x64xf32> to vector<8x16x64xbf16>
    %46 = vector.extract_strided_slice %43 {offsets = [0, 0, 64], sizes = [8, 16, 64], strides = [1, 1, 1]} : vector<8x16x192xf32> to vector<8x16x64xf32>
    %47 = arith.truncf %46 : vector<8x16x64xf32> to vector<8x16x64xbf16>
    %48 = vector.extract_strided_slice %43 {offsets = [0, 0, 128], sizes = [8, 16, 64], strides = [1, 1, 1]} : vector<8x16x192xf32> to vector<8x16x64xf32>
    %49 = arith.truncf %48 : vector<8x16x64xf32> to vector<8x16x64xbf16>
    "tpu.trace_start"() <{level = 10 : i32, message = "bqc,bkc->bqk"}> : () -> ()
    %cst_21 = arith.constant dense<0.000000e+00> : vector<8x16x16xf32>
    %50 = tpu.matmul %45, %47, %cst_21 {dimension_numbers = #tpu.dot_dimension_numbers<[2], [2], [1], [1], [0, 0, 0, 1, 1, 1], [0], [0]>} : vector<8x16x64xbf16>, vector<8x16x64xbf16>, vector<8x16x16xf32> -> vector<8x16x16xf32>
    "tpu.trace_stop"() : () -> ()
    %cst_22 = arith.constant dense<0xFF800000> : vector<8x16xf32>
    %51 = vector.multi_reduction <maximumf>, %50, %cst_22 [2] : vector<8x16x16xf32> to vector<8x16xf32>
    %52 = vector.shape_cast %51 : vector<8x16xf32> to vector<8x16x1xf32>
    %53 = vector.broadcast %52 : vector<8x16x1xf32> to vector<8x16x16xf32>
    %54 = arith.subf %50, %53 : vector<8x16x16xf32>
    %55 = math.exp %54 : vector<8x16x16xf32>
    %cst_23 = arith.constant dense<0.000000e+00> : vector<8x16xf32>
    %56 = vector.multi_reduction <add>, %55, %cst_23 [2] : vector<8x16x16xf32> to vector<8x16xf32>
    %57 = vector.shape_cast %56 : vector<8x16xf32> to vector<8x16x1xf32>
    %58 = tpu.reciprocal %57 {approx = true} : vector<8x16x1xf32> -> vector<8x16x1xf32>
    %59 = vector.broadcast %58 : vector<8x16x1xf32> to vector<8x16x16xf32>
    %60 = arith.mulf %55, %59 : vector<8x16x16xf32>
    %61 = arith.truncf %60 : vector<8x16x16xf32> to vector<8x16x16xbf16>
    "tpu.trace_start"() <{level = 10 : i32, message = "bqk,bkc->bqc"}> : () -> ()
    %cst_24 = arith.constant dense<0.000000e+00> : vector<8x16x64xf32>
    %62 = tpu.matmul %61, %49, %cst_24 {dimension_numbers = #tpu.dot_dimension_numbers<[2], [1], [1], [2], [0, 0, 0, 1, 1, 2], [0], [0]>} : vector<8x16x16xbf16>, vector<8x16x64xbf16>, vector<8x16x64xf32> -> vector<8x16x64xf32>
    "tpu.trace_stop"() : () -> ()
    %63 = vector.shape_cast %62 : vector<8x16x64xf32> to vector<128x64xf32>
    %64 = arith.truncf %63 : vector<128x64xf32> to vector<128x64xbf16>
    %c0_25 = arith.constant 0 : index
    %c0_26 = arith.constant 0 : index
    %65 = vector.load %arg8[%c0_25, %c0_26] : memref<64x64xbf16, #tpu.memory_space<vmem>>, vector<64x64xbf16>
    %cst_27 = arith.constant dense<0.000000e+00> : vector<128x64xf32>
    %66 = tpu.matmul %64, %65, %cst_27 {dimension_numbers = #tpu.dot_dimension_numbers<[1], [0], [0], [1], [0, 0, 1, 1], [], []>} : vector<128x64xbf16>, vector<64x64xbf16>, vector<128x64xf32> -> vector<128x64xf32>
    %c0_28 = arith.constant 0 : index
    %c0_29 = arith.constant 0 : index
    %67 = vector.load %arg9[%c0_28, %c0_29] : memref<1x64xf32, #tpu.memory_space<vmem>>, vector<1x64xf32>
    %68 = vector.broadcast %67 : vector<1x64xf32> to vector<128x64xf32>
    %69 = arith.addf %66, %68 : vector<128x64xf32>
    %70 = vector.shape_cast %69 : vector<128x64xf32> to vector<8x16x64xf32>
    %71 = arith.addf %0, %70 : vector<8x16x64xf32>
    %c0_30 = arith.constant 0 : index
    %c0_31 = arith.constant 0 : index
    %c0_32 = arith.constant 0 : index
    %72 = vector.load %arg10[%c0_30, %c0_31, %c0_32] : memref<8x16x64xf32, #tpu.memory_space<vmem>>, vector<8x16x64xf32>
    tpu.vector_store %arg10[%c0_30, %c0_31, %c0_32], %71 {strides = array<i32>} : memref<8x16x64xf32, #tpu.memory_space<vmem>>, vector<8x16x64xf32>,
    return
  }
  func.func @transform_0(%arg0: i32) -> (i32, i32, i32) {
    %c0_i32 = arith.constant 0 : i32
    %c0_i32_0 = arith.constant 0 : i32
    %c0_i32_1 = arith.constant 0 : i32
    return %arg0, %c0_i32, %c0_i32_0 : i32, i32, i32
  }
  func.func @transform_1(%arg0: i32) -> (i32, i32) {
    %c0_i32 = arith.constant 0 : i32
    %c0_i32_0 = arith.constant 0 : i32
    %c0_i32_1 = arith.constant 0 : i32
    return %c0_i32, %c0_i32_0 : i32, i32
  }
  func.func @transform_2(%arg0: i32) -> (i32, i32) {
    %c0_i32 = arith.constant 0 : i32
    %c0_i32_0 = arith.constant 0 : i32
    %c0_i32_1 = arith.constant 0 : i32
    return %c0_i32, %c0_i32_0 : i32, i32
  }
  func.func @transform_3(%arg0: i32) -> (i32, i32) {
    %c0_i32 = arith.constant 0 : i32
    %c0_i32_0 = arith.constant 0 : i32
    %c0_i32_1 = arith.constant 0 : i32
    return %c0_i32, %c0_i32_0 : i32, i32
  }
  func.func @transform_4(%arg0: i32) -> (i32, i32) {
    %c0_i32 = arith.constant 0 : i32
    %c0_i32_0 = arith.constant 0 : i32
    %c0_i32_1 = arith.constant 0 : i32
    return %c0_i32, %c0_i32_0 : i32, i32
  }
  func.func @transform_5(%arg0: i32) -> (i32, i32) {
    %c0_i32 = arith.constant 0 : i32
    %c0_i32_0 = arith.constant 0 : i32
    %c0_i32_1 = arith.constant 0 : i32
    return %c0_i32, %c0_i32_0 : i32, i32
  }
  func.func @transform_6(%arg0: i32) -> (i32, i32) {
    %c0_i32 = arith.constant 0 : i32
    %c0_i32_0 = arith.constant 0 : i32
    %c0_i32_1 = arith.constant 0 : i32
    return %c0_i32, %c0_i32_0 : i32, i32
  }
  func.func @transform_7(%arg0: i32) -> (i32, i32) {
    %c0_i32 = arith.constant 0 : i32
    %c0_i32_0 = arith.constant 0 : i32
    %c0_i32_1 = arith.constant 0 : i32
    return %c0_i32, %c0_i32_0 : i32, i32
  }
  func.func @transform_8(%arg0: i32) -> (i32, i32) {
    %c0_i32 = arith.constant 0 : i32
    %c0_i32_0 = arith.constant 0 : i32
    %c0_i32_1 = arith.constant 0 : i32
    return %c0_i32, %c0_i32_0 : i32, i32
  }
  func.func @transform_9(%arg0: i32) -> (i32, i32, i32) {
    %c0_i32 = arith.constant 0 : i32
    %c0_i32_0 = arith.constant 0 : i32
    %c0_i32_1 = arith.constant 0 : i32
    return %arg0, %c0_i32, %c0_i32_0 : i32, i32, i32
  }
}

</mosaic_0001>

<bundles_post_ra>
// kernel: tpu_custom_call.1
= control target key start
LH: loop header
LB: loop body
LE: loop exit
PB: predicated region body
PF: predicated region fallthrough
CT: control target
= control target key end

     0   :  { %14 = vsyncpa [#allocation3], 0  ;;  %s4041_s0 = inlined_call_operand.hbm [shape: f32[16,16,64], index: 0, kind: input, shape index: {}]   ;;  %s4042_s1 = inlined_call_operand.vmem [shape: f32[1,64], index: 1, kind: input, shape index: {}]   ;;  %s4043_s2 = inlined_call_operand.vmem [shape: f32[1,64], index: 2, kind: input, shape index: {}]   ;;  %s4044_s3 = inlined_call_operand.vmem [shape: f32[64,32], index: 3, kind: input, shape index: {}]   ;;  %s4045_s4 = inlined_call_operand.vmem [shape: f32[32,64], index: 4, kind: input, shape index: {}]   ;;  %s4046_s5 = inlined_call_operand.vmem [shape: bf16[64,192], index: 5, kind: input, shape index: {}]   ;;  %s4047_s6 = inlined_call_operand.vmem [shape: f32[1,192], index: 6, kind: input, shape index: {}]   ;;  %s4048_s7 = inlined_call_operand.hbm [shape: bf16[64,64], index: 7, kind: input, shape index: {}]   ;;  %s4049_s8 = inlined_call_operand.vmem [shape: f32[1,64], index: 8, kind: input, shape index: {}]   ;;  %s4050_s9 = inlined_call_operand.hbm [shape: f32[16,16,64], index: 9, kind: output, shape index: {}]  }
   0x1   :  { %16 = vsyncpa [#allocation3 + $0x1], 0 }
   0x2   :  { %17 = vsyncpa [#allocation6], 0 }
   0x3   :  { %18 = vsyncpa [#allocation4], 0 }
   0x4   :  { %20 = vsyncpa [#allocation4 + $0x1], 0  ;;  %s3116_s30 = smov 0   ;;  %s3118_s10 = smov 0  }
   0x5   :  { %s3120_s11 = smov 0   ;;  %s3122_s12 = smov 0  }
   0x6 LB: > { %s3137_s13 = sadd.s32 4294967295, %s3050_s12   ;;  %s2449_s14 = sadd.s32 4294967294, %s3050_s12   ;;  %s3050_s12 = sphi %s3122_s12, %s4073_s12   ;;  %s3046_s11 = sphi %s3120_s11, %s4076_s11   ;;  %s3042_s10 = sphi %s3118_s10, %s4075_s10   ;;  %s3038_s30 = sphi %s3116_s30, %s4074_s30  }
   0x7   : > { %p46_p0 = scmp.ne.s32.totalorder %s3042_s10, %s3038_s30  ;;  %p4051_p1 = scmp.eq.s32.totalorder %s3137_s13, 0 }
   0x8   : > { %p244_p3 = scmp.eq.s32.totalorder %s2449_s14, 1  ;;  %p2450_p5 = scmp.ge.s32.totalorder %s3050_s12, 1 }
   0x9   : > { %p3146_p4 = por %p4051_p1, %p46_p0  ;;  %p251_p7 = scmp.lt.s32.totalorder %s3050_s12, 3 }
   0xa   : > { %p3151_p6 = por %p244_p3, %p46_p0  ;;  %s3052_s18 = smov [#allocation5]  }
   0xb   : > { %s4057_s15 = scalar_select %p3146_p4, 1, 0 }
   0xc   : > { %s4058_s16 = scalar_select %p3151_p6, 1, 0 }
   0xd   : > { %p3156_p8 = pnand %p2450_p5, %p251_p7  ;;  %s281_s19 = sshll.u32 %s3052_s18, 4  ;;  %s3160_s19 = int_to_ptr.vmem [resolvable:$true] %s281_s19 }
   0xe   : > { %4059 = sst [smem:[#allocation11_spill]] %s4058_s16  ;;  %s3172_s21 = sadd.s32 1, %s3050_s12  }
   0xf   : > { %s4060_s17 = scalar_select %p3156_p8, 1, 0 }
  0x10   : > { %p2764_p9 = pneg %p3156_p8  ;;  %4062 = sst [smem:[#allocation12_spill]] %s3172_s21 }
  0x11   : > { %s33_s22 = sadd.s32 1, %s3046_s11  ;;  %s30_s23 = ssub.s32 %s3050_s12, %s3172_s21 }
  0x12   : > { %p3167_p11 = pnand %p2764_p9, %p4051_p1  ;;  %s2922_s26 = scalar_lea.hbm %s4048_s7, 512 }
  0x13   : > { %p2923_p12 = scmp.ne.s32.totalorder %s4048_s7, %s2922_s26  ;;  %p2929_p5 = scmp.lt.u32.totalorder %s2922_s26, %s4048_s7 }
  0x14   : > { %p2924_p13 = pneg %p3167_p11 }
  0x16   : > { %p2925_p0 = pnand %p2924_p13, %p2923_p12 }
  0x18   : > { %p2926_p3 = pneg %p2925_p0 }
  0x1a   : > { %p2931_p7 = pnand %p2929_p5, %p2926_p3 }
  0x1c   : > { %2934 = shalt.err (!%p2931_p7)
}
  0x1d   : > { %s2935_s18 = scalar_lea.vmem %s3160_s19, 512  ;;  %p2943_p2 = scmp.lt.s32.totalorder %s3160_s19, %s3160_s19 }
  0x1e   : > { %p2936_p9 = scmp.ne.s32.totalorder %s3160_s19, %s2935_s18  ;;  %p2944_p6 = scmp.lt.s32.totalorder %s2935_s18, %s2935_s18 }
  0x20   : > { %p2938_p10 = pnand %p2936_p9, %p2924_p13  ;;  %p2945_p4 = por %p2944_p6, %p2943_p2 }
  0x22   : > { %p2939_p1 = pneg %p2938_p10 }
  0x24   : > { %p2946_p8 = pnand %p2945_p4, %p2939_p1 }
  0x26   : > { %2949 = shalt.err (!%p2946_p8)
}
  0x27   : > { %s3053_s24 = smov 64   ;;  %s3054_s25 = smov 4  }
  0x28   : > { %2767 = dma.hbm_to_vmem [thread:$0]  (!%p3167_p11), %s4048_s7, 512, %s3160_s19, [#allocation6], %s3053_s24, %s3053_s24, %s3054_s25  }
  0x29   : > { %p31_p2 = scmp.eq.s32.totalorder %s30_s23, 0  ;;  %p40_p1 = scmp.ne.s32.totalorder %s3046_s11, %s3042_s10 }
  0x2a   : > { %p41_p4 = scmp.eq.s32.totalorder %s3050_s12, 0  ;;  %p2777_p6 = scmp.lt.s32.totalorder %s3050_s12, 2 }
  0x2b   : > { %s3203_s28 = scalar_select %p31_p2, %s3046_s11, %s33_s22  }
  0x2c   : > { %p42_p8 = por %p41_p4, %p40_p1  ;;  %p4063_p10 = scmp.eq.s32.totalorder %s3137_s13, 1 }
  0x2d   : > { %s298_s14 = sand.u32 1, %s3046_s11   ;;  %s2519_s18 = sshll.u32 %s3050_s12, 11 }
  0x2e   : > { %p3207_p12 = por %p4063_p10, %p40_p1  ;;  %s2453_s21 = sshll.u32 %s298_s14, 7 }
  0x2f   : > { %s3216_s26 = scalar_lea.hbm %s4041_s0, %s2519_s18  ;;  %s302_s19 = scalar_lea.vmem [#allocation2], %s2453_s21 }
  0x30   : > { %s310_s22 = sshll.u32 %s302_s19, 4  ;;  %p3218_p11 = pnand %p2777_p6, %p42_p8  ;;  %s3222_s22 = int_to_ptr.vmem [resolvable:$true] %s310_s22 }
  0x31   : > { %s3224_s24 = scalar_lea.sflag [#allocation3], %s298_s14  ;;  %s2950_s25 = scalar_lea.hbm %s3216_s26, 2048 }
  0x32   : > { %p2951_p13 = scmp.ne.s32.totalorder %s3216_s26, %s2950_s25  ;;  %p2952_p0 = pneg %p3218_p11 }
  0x33   : > { %s2955_s27 = scalar_lea.hbm %s4041_s0, 4096  ;;  %p2956_p7 = scmp.lt.u32.totalorder %s3216_s26, %s4041_s0 }
  0x34   : > { %p2953_p3 = pnand %p2952_p0, %p2951_p13  ;;  %p2957_p9 = scmp.lt.u32.totalorder %s2955_s27, %s2950_s25 }
  0x35   : > { %p2959_p1 = scmp.lt.u32.totalorder %s2950_s25, %s3216_s26 }
  0x36   : > { %p2954_p5 = pneg %p2953_p3  ;;  %p2958_p2 = por %p2957_p9, %p2956_p7 }
  0x38   : > { %p2960_p4 = por %p2959_p1, %p2958_p2 }
  0x3a   : > { %p2961_p6 = pnand %p2960_p4, %p2954_p5 }
  0x3c   : > { %2964 = shalt.err (!%p2961_p6)
}
  0x3d   : > { %s2965_s14 = scalar_lea.vmem %s3222_s22, 2048  ;;  %s3055_s19 = smov [#allocation2]  }
  0x3e   : > { %p2966_p8 = scmp.ne.s32.totalorder %s3222_s22, %s2965_s14  ;;  %s2970_s16 = sshll.u32 %s3055_s19, 4  ;;  %s2971_s16 = int_to_ptr.vmem [resolvable:$false] %s2970_s16 }
  0x3f   : > { %s2972_s21 = scalar_lea.vmem %s2971_s16, 4096  ;;  %p2973_p3 = scmp.lt.s32.totalorder %s3222_s22, %s2971_s16 }
  0x40   : > { %p2968_p10 = pnand %p2966_p8, %p2952_p0  ;;  %p2974_p7 = scmp.lt.s32.totalorder %s2972_s21, %s2965_s14 }
  0x42   : > { %p2969_p13 = pneg %p2968_p10  ;;  %p2975_p9 = por %p2974_p7, %p2973_p3 }
  0x44   : > { %p2976_p2 = pnand %p2975_p9, %p2969_p13 }
  0x46   : > { %2979 = shalt.err (!%p2976_p2)
}
  0x47   : > { %s3056_s25 = smov 128   ;;  %s3057_s27 = smov 8  }
  0x48   : > { %2771 = dma.hbm_to_vmem [thread:$0]  (!%p3218_p11), %s3216_s26, 2048, %s3222_s22, %s3224_s24, %s3056_s25, %s3056_s25, %s3057_s27  }
  0x49   : > { %p4066_p0 = scmp.ne.s32.totalorder %s4060_s17, 0 }
  0x4a   : > { %s3255_s18 = sand.u32 (!%p4066_p0), 1, %s3042_s10   ;;  %p4067_p5 = scmp.ne.s32.totalorder (!%p4066_p0), %s4057_s15, 0 }
  0x4b   : > { %322 = sbr.rel (%p4066_p0) target bundleno = 1984 (0x7c0), region = 56  ;;  %s2458_s20 = sshll.u32 (!%p4066_p0), %s3255_s18, 7 }
  0x4c   : > { %s325_s14 = scalar_lea.sflag (!%p4066_p0), [#allocation3], %s3255_s18  ;;  %s3261_s19 = scalar_lea.vmem (!%p4066_p0), [#allocation2], %s2458_s20 }
  0x52   : > { %3025 = dma.done.wait (%p4067_p5), %s325_s14, 2048  }
  0x53   : > { %3027 = vsyncadd (%p4067_p5), %s325_s14, 4294965248  ;;  %p4068_p11 = scmp.eq.s32.totalorder %s3137_s13, 0 }
  0x55   : > { %3029 = dma.done.wait (%p4068_p11), [#allocation6], 512   ;;  %p4069_p1 = pmov %p4068_p11 }
  0x56   : > { %v584_v0 = vld [vmem:[%s4044_s3] sm:$0xff]  ;;  %v585_v1 = vld [vmem:[%s4044_s3 + $0x8] sm:$0xff]  ;;  %v586_v2 = vld [vmem:[%s4044_s3 + $0x10] sm:$0xff]  ;;  %vm386_vm0 = vcmask 523264   ;;  %vm555_vm1 = vcmask 1041409   ;;  %vm557_vm2 = vcmask 1042434  }
  0x57   : > { %3031 = vsyncadd (%p4069_p1), [#allocation6], 4294966784  ;;  %v2732_v3 = vpack.c.bf16 %v585_v1, %v584_v0  ;;  %v587_v4 = vld [vmem:[%s4044_s3 + $0x18] sm:$0xff]  ;;  %v588_v5 = vld [vmem:[%s4044_s3 + $0x20] sm:$0xff]  ;;  %vm559_vm3 = vcmask 1043459   ;;  %vm561_vm4 = vcmask 1044484  }
  0x58   : > { %v589_v6 = vld [vmem:[%s4044_s3 + $0x28] sm:$0xff]  ;;  %v2736_v7 = vpack.c.bf16 %v587_v4, %v586_v2  ;;  %v590_v8 = vld [vmem:[%s4044_s3 + $0x30] sm:$0xff]  ;;  %v591_v9 = vld [vmem:[%s4044_s3 + $0x38] sm:$0xff]  ;;  %vm563_vm5 = vcmask 1045509   ;;  %vm565_vm6 = vcmask 1046534   ;;  %vm567_vm7 = vcmask 1047559  }
  0x59   : > { %v3296_v10 = vld [vmem:[%s3261_s19] sm:$0xff]  ;;  %2733 = vmatprep.subr.bf16.mxu1 %v2732_v3  ;;  %v2740_v11 = vpack.c.bf16 %v589_v6, %v588_v5  ;;  %v3298_v12 = vpack.c.bf16 %v591_v9, %v590_v8  ;;  %v3301_v13 = vld [vmem:[%s3261_s19 + $0x8] sm:$0xff]  ;;  %v3304_v14 = vld [vmem:[%s3261_s19 + $0x10] sm:$0xff]  ;;  %vm682_vm8 = vcmask 261120   ;;  %vm3061_vm9 = vmmov 0   ;;  %s3062_s22 = smov 64  }
  0x5a   : > { %v3307_v15 = vld [vmem:[%s3261_s19 + $0x18] sm:$0xff]  ;;  %v387_v16 = vsel %vm386_vm0, %v3296_v10, 0.0  ;;  %v3313_v17 = vmul.f32 %v3296_v10, %v3296_v10  ;;  %2735 = vmatpush3.bf16.msra.mxu1 %v2732_v3  ;;  %v3316_v18 = vld [vmem:[%s3261_s19 + $0x20] sm:$0xff]  ;;  %v3319_v19 = vld [vmem:[%s3261_s19 + $0x28] sm:$0xff]  ;;  %v388_v21 = vsel %vm386_vm0, %v3301_v13, 0.0  ;;  %v396_v22 = vsel %vm386_vm0, %v3304_v14, 0.0 }
  0x5b   : > { %v3322_v20 = vld [vmem:[%s3261_s19 + $0x30] sm:$0xff]  ;;  %v397_v23 = vsel %vm386_vm0, %v3307_v15, 0.0  ;;  %v3332_v24 = vmul.f32 %v3301_v13, %v3301_v13  ;;  %2737 = vmatprep.subr.bf16.mxu1 %v2736_v7  ;;  %v3335_v25 = vld [vmem:[%s3261_s19 + $0x38] sm:$0xff]  ;;  %v3338_v26 = vld [vmem:[%s3261_s19 + $0x40] sm:$0xff]  ;;  %v389_v28 = vadd.f32 %v388_v21, %v387_v16  ;;  %v405_v30 = vsel %vm386_vm0, %v3316_v18, 0.0  ;;  %s3930_s15 = scalar_lea.vmem [#allocation7], %s2458_s20 }
  0x5c   : > { %v3341_v27 = vld [vmem:[%s3261_s19 + $0x48] sm:$0xff]  ;;  %v398_v29 = vadd.f32 %v397_v23, %v396_v22  ;;  %v406_v31 = vsel %vm386_vm0, %v3319_v19, 0.0  ;;  %v3348_v32 = vld [vmem:[%s3261_s19 + $0x50] sm:$0xff]  ;;  %v3351_v33 = vld [vmem:[%s3261_s19 + $0x58] sm:$0xff]  ;;  %v414_v35 = vsel %vm386_vm0, %v3322_v20, 0.0  ;;  %v415_v36 = vsel %vm386_vm0, %v3335_v25, 0.0 }
  0x5d   : > { %v407_v34 = vadd.f32 %v406_v31, %v405_v30  ;;  %v423_v37 = vsel %vm386_vm0, %v3338_v26, 0.0  ;;  %v3360_v38 = vld [vmem:[%s3261_s19 + $0x60] sm:$0xff]  ;;  %v3363_v39 = vld [vmem:[%s3261_s19 + $0x68] sm:$0xff]  ;;  %v3366_v40 = vld [vmem:[%s3261_s19 + $0x70] sm:$0xff]  ;;  %v390_v41 = vrot.slane %v389_v28, 4  ;;  %v416_v43 = vadd.f32 %v415_v36, %v414_v35  ;;  %s2521_s20 = sshll.u32 %s3137_s13, 11 }
  0x5e   : > { %v399_v42 = vrot.slane %v398_v29, 4  ;;  %v424_v44 = vsel %vm386_vm0, %v3341_v27, 0.0  ;;  %2739 = vmatpush3.bf16.msra.mxu1 %v2736_v7  ;;  %v432_v47 = vsel %vm386_vm0, %v3348_v32, 0.0  ;;  %v433_v48 = vsel %vm386_vm0, %v3351_v33, 0.0  ;;  %v3379_v57 = vld [vmem:[%s3261_s19 + $0x78] sm:$0xff]  ;;  %s2366_s16 = sshll.u32 %s3930_s15, 4  ;;  %s3988_s25 = scalar_lea.hbm %s4050_s9, %s2521_s20  ;;  %s3990_s16 = int_to_ptr.vmem [resolvable:$true] %s2366_s16 }
  0x5f   : > { %v408_v45 = vrot.slane %v407_v34, 4  ;;  %v425_v46 = vadd.f32 %v424_v44, %v423_v37  ;;  %2741 = vmatprep.subr.bf16.mxu1 %v2740_v11  ;;  %v391_v49 = vadd.f32 %v390_v41, %v389_v28  ;;  %v417_v51 = vrot.slane %v416_v43, 4  ;;  %s2352_s27 = scalar_lea.sflag [#allocation4], %s3255_s18  ;;  %s2980_s14 = scalar_lea.vmem %s3990_s16, 2048 }
  0x60   : > { %v400_v50 = vadd.f32 %v399_v42, %v398_v29  ;;  %v434_v52 = vadd.f32 %v433_v48, %v432_v47  ;;  %v441_v55 = vsel %vm386_vm0, %v3360_v38, 0.0  ;;  %v442_v56 = vsel %vm386_vm0, %v3363_v39, 0.0  ;;  %p2981_p4 = scmp.ne.s32.totalorder %s3990_s16, %s2980_s14  ;;  %s3063_s17 = smov [#allocation7]  }
  0x61   : > { %v409_v53 = vadd.f32 %v408_v45, %v407_v34  ;;  %v426_v54 = vrot.slane %v425_v46, 4  ;;  %v392_v58 = vrot.slane %v391_v49, 2  ;;  %v418_v60 = vadd.f32 %v417_v51, %v416_v43  ;;  %s2984_s26 = sshll.u32 %s3063_s17, 4  ;;  %s2985_s26 = int_to_ptr.vmem [resolvable:$false] %s2984_s26 }
  0x62   : > { %v401_v59 = vrot.slane %v400_v50, 2  ;;  %v435_v61 = vrot.slane %v434_v52, 4  ;;  %2743 = vmatpush3.bf16.msra.mxu1 %v2740_v11  ;;  %v443_v0 = vadd.f32 %v442_v56, %v441_v55  ;;  %v450_v1 = vsel %vm386_vm0, %v3366_v40, 0.0  ;;  %p2982_p6 = pnand %p2981_p4, %p3207_p12  ;;  %p2987_p10 = scmp.lt.s32.totalorder %s3990_s16, %s2985_s26 }
  0x63   : > { %v410_v62 = vrot.slane %v409_v53, 2  ;;  %v427_v63 = vadd.f32 %v426_v54, %v425_v46  ;;  %2745 = vmatprep.subr.bf16.mxu1 %v3298_v12  ;;  %v393_v2 = vadd.f32 %v392_v58, %v391_v49  ;;  %v419_v4 = vrot.slane %v418_v60, 2 }
  0x64   : > { %v402_v3 = vadd.f32 %v401_v59, %v400_v50  ;;  %v436_v5 = vadd.f32 %v435_v61, %v434_v52  ;;  %v444_v8 = vrot.slane %v443_v0, 4  ;;  %v451_v9 = vsel %vm386_vm0, %v3379_v57, 0.0  ;;  %p2983_p8 = pneg %p2982_p6 }
  0x65   : > { %v411_v6 = vadd.f32 %v410_v62, %v409_v53  ;;  %v428_v7 = vrot.slane %v427_v63, 2  ;;  %v394_v11 = vrot.slane %v393_v2, 1  ;;  %v420_v21 = vadd.f32 %v419_v4, %v418_v60 }
  0x66   : > { %v403_v16 = vrot.slane %v402_v3, 1  ;;  %v437_v22 = vrot.slane %v436_v5, 2  ;;  %2747 = vmatpush3.bf16.msra.mxu1 %v3298_v12  ;;  %v445_v29 = vadd.f32 %v444_v8, %v443_v0  ;;  %v452_v30 = vadd.f32 %v451_v9, %v450_v1 }
  0x67   : > { %v412_v23 = vrot.slane %v411_v6, 1  ;;  %v429_v28 = vadd.f32 %v428_v7, %v427_v63  ;;  %v395_v31 = vadd.f32 %v394_v11, %v393_v2  ;;  %v421_v35 = vrot.slane %v420_v21, 1 }
  0x68   : > { %v404_v34 = vadd.f32 %v403_v16, %v402_v3  ;;  %v438_v36 = vadd.f32 %v437_v22, %v436_v5  ;;  %v446_v42 = vrot.slane %v445_v29, 2  ;;  %v453_v43 = vrot.slane %v452_v30, 4 }
  0x69   : > { %v413_v37 = vadd.f32 %v412_v23, %v411_v6  ;;  %v430_v41 = vrot.slane %v429_v28, 1  ;;  %v422_v44 = vadd.f32 %v421_v35, %v420_v21  ;;  %v461_v12 = vmul.f32 %v3304_v14, %v3304_v14 }
  0x6a   : > { %v439_v45 = vrot.slane %v438_v36, 1  ;;  %v556_v46 = vsel %vm555_vm1, %v404_v34, %v395_v31  ;;  %v447_v48 = vadd.f32 %v446_v42, %v445_v29  ;;  %v454_v49 = vadd.f32 %v453_v43, %v452_v30 }
  0x6b   : > { %v431_v47 = vadd.f32 %v430_v41, %v429_v28  ;;  %v558_v50 = vsel %vm557_vm2, %v413_v37, %v556_v46  ;;  %v462_v53 = vmul.f32 %v3307_v15, %v3307_v15  ;;  %v463_v54 = vmul.f32 %v3316_v18, %v3316_v18 }
  0x6c   : > { %v440_v51 = vadd.f32 %v439_v45, %v438_v36  ;;  %v560_v52 = vsel %vm559_vm3, %v422_v44, %v558_v50  ;;  %v448_v55 = vrot.slane %v447_v48, 1  ;;  %v455_v56 = vrot.slane %v454_v49, 2 }
  0x6d   : > { %v562_v58 = vsel %vm561_vm4, %v431_v47, %v560_v52  ;;  %v464_v59 = vmul.f32 %v3319_v19, %v3319_v19  ;;  %v465_v61 = vmul.f32 %v3322_v20, %v3322_v20  ;;  %v466_v62 = vmul.f32 %v3335_v25, %v3335_v25 }
  0x6e   : > { %v564_v60 = vsel %vm563_vm5, %v440_v51, %v562_v58  ;;  %v467_v63 = vmul.f32 %v3338_v26, %v3338_v26  ;;  %v449_v0 = vadd.f32 %v448_v55, %v447_v48  ;;  %v456_v1 = vadd.f32 %v455_v56, %v454_v49 }
  0x6f   : > { %v468_v2 = vmul.f32 %v3341_v27, %v3341_v27  ;;  %v469_v3 = vmul.f32 %v3348_v32, %v3348_v32  ;;  %v470_v4 = vmul.f32 %v3351_v33, %v3351_v33  ;;  %v471_v5 = vmul.f32 %v3360_v38, %v3360_v38 }
  0x70   : > { %v472_v6 = vmul.f32 %v3363_v39, %v3363_v39  ;;  %v473_v7 = vmul.f32 %v3366_v40, %v3366_v40  ;;  %v457_v8 = vrot.slane %v456_v1, 1  ;;  %v566_v9 = vsel %vm565_vm6, %v449_v0, %v564_v60 }
  0x71   : > { %v474_v11 = vmul.f32 %v3379_v57, %v3379_v57  ;;  %v475_v16 = vsel %vm386_vm0, %v3313_v17, 0.0  ;;  %v476_v21 = vsel %vm386_vm0, %v3332_v24, 0.0  ;;  %v484_v22 = vsel %vm386_vm0, %v461_v12, 0.0 }
  0x72   : > { %v485_v23 = vsel %vm386_vm0, %v462_v53, 0.0  ;;  %v493_v28 = vsel %vm386_vm0, %v463_v54, 0.0  ;;  %v458_v29 = vadd.f32 %v457_v8, %v456_v1  ;;  %v477_v30 = vadd.f32 %v476_v21, %v475_v16 }
  0x73   : > { %v486_v31 = vadd.f32 %v485_v23, %v484_v22  ;;  %v494_v34 = vsel %vm386_vm0, %v464_v59, 0.0  ;;  %v502_v36 = vsel %vm386_vm0, %v465_v61, 0.0  ;;  %v503_v37 = vsel %vm386_vm0, %v466_v62, 0.0 }
  0x74   : > { %v495_v35 = vadd.f32 %v494_v34, %v493_v28  ;;  %v511_v17 = vsel %vm386_vm0, %v467_v63, 0.0  ;;  %v568_v24 = vsel %vm567_vm7, %v458_v29, %v566_v9  ;;  %v478_v41 = vrot.slane %v477_v30, 4 }
  0x75   : > { %v487_v42 = vrot.slane %v486_v31, 4  ;;  %v504_v43 = vadd.f32 %v503_v37, %v502_v36  ;;  %2598 = vmatprep.mubr.msk.f32.mxu1 %vm386_vm0, %v568_v24  ;;  %v512_v45 = vsel %vm386_vm0, %v468_v2, 0.0  ;;  %v520_v46 = vsel %vm386_vm0, %v469_v3, 0.0 }
  0x76   : > { %v496_v44 = vrot.slane %v495_v35, 4  ;;  %v521_v12 = vsel %vm386_vm0, %v470_v4, 0.0  ;;  %v479_v47 = vadd.f32 %v478_v41, %v477_v30  ;;  %v513_v50 = vadd.f32 %v512_v45, %v511_v17 }
  0x77   : > { %v488_v48 = vadd.f32 %v487_v42, %v486_v31  ;;  %v505_v49 = vrot.slane %v504_v43, 4  ;;  %v522_v52 = vadd.f32 %v521_v12, %v520_v46  ;;  %v529_v53 = vsel %vm386_vm0, %v471_v5, 0.0 }
  0x78   : > { %v497_v51 = vadd.f32 %v496_v44, %v495_v35  ;;  %v530_v54 = vsel %vm386_vm0, %v472_v6, 0.0  ;;  %v480_v55 = vrot.slane %v479_v47, 2  ;;  %v514_v59 = vrot.slane %v513_v50, 4 }
  0x79   : > { %v489_v56 = vrot.slane %v488_v48, 2  ;;  %v506_v58 = vadd.f32 %v505_v49, %v504_v43  ;;  %v523_v61 = vrot.slane %v522_v52, 4  ;;  %v531_v62 = vadd.f32 %v530_v54, %v529_v53 }
  0x7a   : > { %v498_v60 = vrot.slane %v497_v51, 2  ;;  %v538_v63 = vsel %vm386_vm0, %v473_v7, 0.0  ;;  %v481_v0 = vadd.f32 %v480_v55, %v479_v47  ;;  %v515_v3 = vadd.f32 %v514_v59, %v513_v50 }
  0x7b   : > { %v490_v1 = vadd.f32 %v489_v56, %v488_v48  ;;  %v507_v2 = vrot.slane %v506_v58, 2  ;;  %v524_v8 = vadd.f32 %v523_v61, %v522_v52  ;;  %v532_v9 = vrot.slane %v531_v62, 4  ;;  %v679_v61 = vld [vmem:[%s4045_s4 + $0x8] sm:$0xff] }
  0x7c   : > { %v499_v4 = vadd.f32 %v498_v60, %v497_v51  ;;  %v539_v5 = vsel %vm386_vm0, %v474_v11, 0.0  ;;  %v482_v16 = vrot.slane %v481_v0, 1  ;;  %v516_v22 = vrot.slane %v515_v3, 2  ;;  %v678_v60 = vld [vmem:[%s4045_s4] sm:$0xff] }
  0x7d   : > { %v491_v6 = vrot.slane %v490_v1, 1  ;;  %v508_v21 = vadd.f32 %v507_v2, %v506_v58  ;;  %v525_v28 = vrot.slane %v524_v8, 2  ;;  %v533_v29 = vadd.f32 %v532_v9, %v531_v62  ;;  %v680_v62 = vld [vmem:[%s4045_s4 + $0x10] sm:$0xff] }
  0x7e   : > { %v500_v23 = vrot.slane %v499_v4, 1  ;;  %v540_v30 = vadd.f32 %v539_v5, %v538_v63  ;;  %v483_v31 = vadd.f32 %v482_v16, %v481_v0  ;;  %v517_v35 = vadd.f32 %v516_v22, %v515_v3  ;;  %v681_v0 = vld [vmem:[%s4045_s4 + $0x18] sm:$0xff]  ;;  %v2826_v22 = vld [vmem:[%s4046_s5 + $0x4] ss:$8 sps:$4 sm:$0xff]  }
  0x7f   : > { %v492_v34 = vadd.f32 %v491_v6, %v490_v1  ;;  %v509_v7 = vrot.slane %v508_v21, 1  ;;  %v526_v37 = vadd.f32 %v525_v28, %v524_v8  ;;  %v534_v17 = vrot.slane %v533_v29, 2  ;;  %v2829_v28 = vld [vmem:[%s4046_s5 + $0x14] ss:$8 sps:$4 sm:$0xff]  }
  0x80   : > { %v501_v36 = vadd.f32 %v500_v23, %v499_v4  ;;  %v541_v24 = vrot.slane %v540_v30, 4  ;;  %v518_v42 = vrot.slane %v517_v35, 1  ;;  %v2748_v63 = vpack.c.bf16 %v679_v61, %v678_v60  ;;  %v2824_v23 = vld [vmem:[%s4046_s5] ss:$8 sps:$4 sm:$0xff]  }
  0x81   : > { %v510_v41 = vadd.f32 %v509_v7, %v508_v21  ;;  %v577_v11 = vsel %vm555_vm1, %v492_v34, %v483_v31  ;;  %v527_v43 = vrot.slane %v526_v37, 1  ;;  %v535_v44 = vadd.f32 %v534_v17, %v533_v29  ;;  %v2827_v29 = vld [vmem:[%s4046_s5 + $0x10] ss:$8 sps:$4 sm:$0xff]   ;;  %v2830_v31 = vld [vmem:[%s4046_s5 + $0x20] ss:$8 sps:$4 sm:$0xff]  }
  0x82   : > { %v542_v45 = vadd.f32 %v541_v24, %v540_v30  ;;  %v578_v46 = vsel %vm557_vm2, %v501_v36, %v577_v11  ;;  %v519_v12 = vadd.f32 %v518_v42, %v517_v35  ;;  %v2752_v1 = vpack.c.bf16 %v681_v0, %v680_v62  ;;  %2749 = vmatprep.subr.bf16.mxu1 %v2748_v63  ;;  %v2832_v30 = vld [vmem:[%s4046_s5 + $0x24] ss:$8 sps:$4 sm:$0xff]   ;;  %v2835_v34 = vld [vmem:[%s4046_s5 + $0x34] ss:$8 sps:$4 sm:$0xff]   ;;  %v2833_v7 = vld [vmem:[%s4046_s5 + $0x30] ss:$8 sps:$4 sm:$0xff]  }
  0x83   : > { %v579_v47 = vsel %vm559_vm3, %v510_v41, %v578_v46  ;;  %v528_v48 = vadd.f32 %v527_v43, %v526_v37  ;;  %v536_v49 = vrot.slane %v535_v44, 1  ;;  %v3058_v35 = vmov 0   ;;  %v2465_v42 = vld [vmem:[%s4042_s1] ss:$0 sm:$0xff] }
  0x84   : > { %v543_v50 = vrot.slane %v542_v45, 2  ;;  %v580_v51 = vsel %vm561_vm4, %v519_v12, %v579_v47  ;;  %v3059_v36 = vmov 1966171168   ;;  %v786_v17 = vlaneseq  ;;  %v2466_v46 = vld [vmem:[%s4043_s2] ss:$0 sm:$0xff] }
  0x85   : > { %v537_v52 = vadd.f32 %v536_v49, %v535_v44  ;;  %v581_v54 = vsel %vm563_vm5, %v528_v48, %v580_v51  ;;  %v784_v37 = vunpack.c.l.s4 %v3059_v36  ;;  %vm1614_vm10 = vcmask 130048  }
  0x86   : > { %v544_v53 = vadd.f32 %v543_v50, %v542_v45  ;;  %v3486_v41 = vshrl.u32 %v786_v17, 7 }
  0x87   : > { %v582_v56 = vsel %vm565_vm6, %v537_v52, %v581_v54  ;;  %v785_v24 = vunpack.c.0.s8 %v784_v37 }
  0x88   : > { %v545_v55 = vrot.slane %v544_v53, 1  ;;  %v3496_v49 = vsub.s32 0, %v3486_v41 }
  0x89   : > { %v788_v11 = vsub.s32 %v785_v24, %v3486_v41 }
  0x8a   : > { %v546_v58 = vadd.f32 %v545_v55, %v544_v53 }
  0x8c   : > { %v583_v59 = vsel %vm567_vm7, %v546_v58, %v582_v56 }
  0x8d   : > { %2599 = vmatmul.mubr.msk.f32.vlgmr.msra.gmra.mrb[0].mxu1 %vm386_vm0, %v583_v59 }
  0x8e   : > { %2751 = vmatpush3.bf16.msra.mxu1 %v2748_v63 }
  0x8f   : > { %2753 = vmatprep.subr.bf16.mxu1 %v2752_v1 }
  0x92   : > { %2755 = vmatpush3.bf16.msra.mxu1 %v2752_v1 }
  0x93   : > { %1085 = vmatprep.subr.bf16.mxu1 %v2826_v22 }
 0x160   : > { %v2600_v2 = vpop.f32.mrb[0].mxu1 }
 0x161   : > { %v662_v3 = vpop.f32.mrb[1].mxu1  ;;  %v672_v8 = vmul.f32 0.03125, %v2600_v2 }
 0x162   : > { %v671_v4 = vmul.f32 0.03125, %v662_v3 }
 0x164   : > { %v673_v9 = vmul.f32 %v671_v4, %v671_v4  ;;  %2609 = vmatprep.mubr.msk.f32.mxu1 %vm682_vm8, %v671_v4 }
 0x166   : > { %v674_v5 = vsub.f32 %v672_v8, %v673_v9 }
 0x168   : > { %v675_v16 = vmax.f32 %v674_v5, 0.0 }
 0x16a   : > { %v676_v6 = vadd.f32 1e-06, %v675_v16 }
 0x16c   : > { %2840 = vrsqrt.f32 %v676_v6 }
 0x176   : > { %v2841_v21 = vpop.eup %2840 }
 0x177   : > { %2610 = vmatmul.mubr.msk.f32.vlgmr.msra.gmra.mrb[2].mxu1 %vm682_vm8, %v2841_v21 }
 0x178   : > { %1086 = vmatpush1.bf16.msra.mxu1 %v2824_v23  ;;  %1117 = vmatprep.mubr.bf16.mxu1 %v3058_v35 }
 0x179   : > { %1087 = vmatprep.subr.bf16.mxu1 %v2829_v28 }
 0x17c   : > { %1088 = vmatpush1.bf16.msra.mxu1 %v2827_v29 }
 0x17d   : > { %1089 = vmatprep.subr.bf16.mxu1 %v2832_v30 }
 0x180   : > { %1090 = vmatpush1.bf16.msra.mxu1 %v2830_v31 }
 0x181   : > { %1091 = vmatprep.subr.bf16.mxu1 %v2835_v34 }
 0x184   : > { %1092 = vmatpush1.bf16.msra.mxu1 %v2833_v7 }
 0x24a   : > { %v2611_v43 = vpop.f32.mrb[2].mxu1 }
 0x24b   : > { %v771_v44 = vmul.f32 %v2611_v43, %v2465_v42  ;;  %v755_v45 = vpop.f32.mrb[3].mxu1 }
 0x24d   : > { %v782_v12 = vcombine.high %v771_v44, %v771_v44  ;;  %v789_v47 = vrot.slane %v771_v44, %v788_v11  ;;  %v773_v48 = vmul.f32 %v771_v44, %v755_v45 }
 0x24f   : > { %v796_v50 = vrot.slane %v782_v12, %v788_v11  ;;  %v797_v51 = vcombine.high %v789_v47, %v789_v47  ;;  %v805_v52 = vrot.slane %v789_v47, %v788_v11  ;;  %v780_v53 = vsub.f32 %v2466_v46, %v773_v48 }
 0x251   : > { %v798_v54 = vcombine.high %v796_v50, %v796_v50  ;;  %v812_v55 = vrot.slane %v796_v50, %v788_v11  ;;  %v819_v56 = vrot.slane %v797_v51, %v788_v11  ;;  %v827_v58 = vcombine.high %v805_v52, %v805_v52 }
 0x252   : > { %v834_v59 = vrot.slane %v805_v52, %v3496_v49  ;;  %v888_v60 = vcombine.high %v780_v53, %v780_v53  ;;  %v895_v61 = vrot.slane %v780_v53, %v788_v11 }
 0x253   : > { %v826_v62 = vrot.slane %v798_v54, %v788_v11  ;;  %v828_v63 = vcombine.high %v812_v55, %v812_v55  ;;  %v829_v0 = vcombine.high %v819_v56, %v819_v56  ;;  %v838_v1 = vrot.slane %v819_v56, %v3496_v49 }
 0x254   : > { %v842_v2 = vrot.slane %v827_v58, %v3496_v49  ;;  %v850_v3 = vrot.slane %v812_v55, %v3496_v49  ;;  %v871_v4 = vmul.f32 %v834_v59, %v3296_v10  ;;  %v872_v8 = vmul.f32 %v834_v59, %v3301_v13 }
 0x255   : > { %v830_v9 = vcombine.high %v826_v62, %v826_v62  ;;  %v846_v5 = vrot.slane %v829_v0, %v3496_v49  ;;  %v854_v16 = vrot.slane %v826_v62, %v3496_v49  ;;  %v858_v6 = vrot.slane %v828_v63, %v3496_v49 }
 0x256   : > { %v902_v21 = vrot.slane %v888_v60, %v788_v11  ;;  %v903_v22 = vcombine.high %v895_v61, %v895_v61  ;;  %v911_v23 = vrot.slane %v895_v61, %v788_v11  ;;  %v873_v28 = vmul.f32 %v838_v1, %v3304_v14 }
 0x257   : > { %v874_v29 = vmul.f32 %v838_v1, %v3307_v15  ;;  %v875_v30 = vmul.f32 %v842_v2, %v3316_v18  ;;  %v876_v10 = vmul.f32 %v842_v2, %v3319_v19  ;;  %v877_v13 = vmul.f32 %v846_v5, %v3322_v20 }
 0x258   : > { %v904_v31 = vcombine.high %v902_v21, %v902_v21  ;;  %v918_v34 = vrot.slane %v902_v21, %v788_v11  ;;  %v925_v7 = vrot.slane %v903_v22, %v788_v11  ;;  %v933_v36 = vcombine.high %v911_v23, %v911_v23 }
 0x259   : > { %v940_v37 = vrot.slane %v911_v23, %v3496_v49  ;;  %v878_v17 = vmul.f32 %v846_v5, %v3335_v25  ;;  %v879_v24 = vmul.f32 %v850_v3, %v3338_v26  ;;  %v880_v14 = vmul.f32 %v850_v3, %v3341_v27 }
 0x25a   : > { %v932_v42 = vrot.slane %v904_v31, %v788_v11  ;;  %v934_v15 = vcombine.high %v918_v34, %v918_v34  ;;  %v935_v43 = vcombine.high %v925_v7, %v925_v7  ;;  %v944_v18 = vrot.slane %v925_v7, %v3496_v49 }
 0x25b   : > { %v948_v19 = vrot.slane %v933_v36, %v3496_v49  ;;  %v956_v20 = vrot.slane %v918_v34, %v3496_v49  ;;  %v977_v44 = vadd.f32 %v940_v37, %v871_v4  ;;  %v978_v45 = vadd.f32 %v940_v37, %v872_v8 }
 0x25c   : > { %v936_v46 = vcombine.high %v932_v42, %v932_v42  ;;  %v979_v12 = vadd.f32 %v944_v18, %v873_v28  ;;  %v980_v47 = vadd.f32 %v944_v18, %v874_v29  ;;  %v952_v25 = vrot.slane %v935_v43, %v3496_v49 }
 0x25d   : > { %v993_v48 = vpack.c.bf16 %v978_v45, %v977_v44  ;;  %v981_v26 = vadd.f32 %v948_v19, %v875_v30  ;;  %v982_v50 = vadd.f32 %v948_v19, %v876_v10  ;;  %v985_v27 = vadd.f32 %v956_v20, %v879_v24 }
 0x25e   : > { %v994_v11 = vpack.c.bf16 %v980_v47, %v979_v12  ;;  %v983_v51 = vadd.f32 %v952_v25, %v877_v13  ;;  %v984_v52 = vadd.f32 %v952_v25, %v878_v17  ;;  %v986_v53 = vadd.f32 %v956_v20, %v880_v14 }
 0x25f   : > { %2475 = vmatmul.mubr.msk.bf16.vlgmr.msra.gmra.mrb[4].mxu1 %vm386_vm0, %v993_v48  ;;  %v995_v54 = vpack.c.bf16 %v982_v50, %v981_v26  ;;  %v881_v55 = vmul.f32 %v854_v16, %v3348_v32  ;;  %v882_v56 = vmul.f32 %v854_v16, %v3351_v33  ;;  %v960_v58 = vrot.slane %v932_v42, %v3496_v49 }
 0x260   : > { %1127 = vmatprep.mubr.bf16.mxu1 %v3058_v35  ;;  %v996_v59 = vpack.c.bf16 %v984_v52, %v983_v51  ;;  %v997_v60 = vpack.c.bf16 %v986_v53, %v985_v27  ;;  %v883_v61 = vmul.f32 %v858_v6, %v3360_v38  ;;  %v884_v62 = vmul.f32 %v858_v6, %v3363_v39 }
 0x261   : > { %v987_v63 = vadd.f32 %v960_v58, %v881_v55  ;;  %v988_v0 = vadd.f32 %v960_v58, %v882_v56  ;;  %v964_v1 = vrot.slane %v934_v15, %v3496_v49  ;;  %v862_v2 = vrot.slane %v830_v9, %v3496_v49  ;;  %v1009_v9 = vld [vmem:[%s4047_s6] sm:$0x3] }
 0x262   : > { %v968_v32 = vrot.slane %v936_v46, %v3496_v49  ;;  %v3558_v6 = vrot.slane %v1009_v9, %v3496_v49 }
 0x263   : > { %v998_v3 = vpack.c.bf16 %v988_v0, %v987_v63  ;;  %v989_v33 = vadd.f32 %v964_v1, %v883_v61  ;;  %v990_v4 = vadd.f32 %v964_v1, %v884_v62  ;;  %v885_v8 = vmul.f32 %v862_v2, %v3366_v40 }
 0x264   : > { %v886_v5 = vmul.f32 %v862_v2, %v3379_v57  ;;  %v3060_v40 = vmov 0.0   ;;  %v1017_v57 = vsub.s32 1, %v3486_v41 }
 0x265   : > { %v999_v16 = vpack.c.bf16 %v990_v4, %v989_v33  ;;  %v991_v21 = vadd.f32 %v968_v32, %v885_v8  ;;  %2666 = vmatprep.subr.bf16.mxu1 %v3060_v40  ;;  %2612 = vmatprep.subr.bf16.mxu0 %v3060_v40 }
 0x266   : > { %v992_v38 = vadd.f32 %v968_v32, %v886_v5  ;;  %2614 = vmatprep.mubr.msk.bf16.mxu0 %vm3061_vm9, %v3060_v40 }
 0x267   : > { %2476 = vmatmul.mubr.msk.bf16.gmra.mrb[8].mxu1 %vm386_vm0, %v994_v11 }
 0x268   : > { %1137 = vmatprep.mubr.bf16.mxu1 %v3058_v35  ;;  %v1000_v39 = vpack.c.bf16 %v992_v38, %v991_v21 }
 0x26f   : > { %2477 = vmatmul.mubr.msk.bf16.gmra.mrb[12].mxu1 %vm386_vm0, %v995_v54 }
 0x270   : > { %1147 = vmatprep.mubr.bf16.mxu1 %v3058_v35 }
 0x277   : > { %2478 = vmatmul.mubr.msk.bf16.gmra.mrb[16].mxu1 %vm386_vm0, %v996_v59 }
 0x278   : > { %1157 = vmatprep.mubr.bf16.mxu1 %v3058_v35 }
 0x27f   : > { %2479 = vmatmul.mubr.msk.bf16.gmra.mrb[20].mxu1 %vm386_vm0, %v997_v60 }
 0x280   : > { %1167 = vmatprep.mubr.bf16.mxu1 %v3058_v35 }
 0x287   : > { %2480 = vmatmul.mubr.msk.bf16.gmra.mrb[24].mxu1 %vm386_vm0, %v998_v3 }
 0x288   : > { %1177 = vmatprep.mubr.bf16.mxu1 %v3058_v35 }
 0x28f   : > { %2481 = vmatmul.mubr.msk.bf16.gmra.mrb[28].mxu1 %vm386_vm0, %v999_v16 }
 0x290   : > { %1187 = vmatprep.mubr.bf16.mxu1 %v3058_v35  ;;  %v3555_v35 = vrot.slane %v1009_v9, %v1017_v57 }
 0x297   : > { %2482 = vmatmul.mubr.msk.bf16.gmra.mrb[32].mxu1 %vm386_vm0, %v1000_v39 }
 0x298   : > { %2668 = vmatprep.mubr.msk.bf16.mxu1 %vm3061_vm9, %v3060_v40 }
 0x332   : > { %v1119_v22 = vpop.f32.mrb[4].mxu1 }
 0x333   : > { %v1121_v23 = vpop.f32.mrb[5].mxu1  ;;  %v1120_v29 = vadd.f32 %v1119_v22, %v3558_v6 }
 0x334   : > { %v3561_v41 = vadd.f32 %v1121_v23, %v3555_v35  ;;  %v1123_v28 = vpop.f32.mrb[6].mxu1 }
 0x335   : > { %v1124_v30 = vadd.f32 %v1123_v28, %v3558_v6  ;;  %v1125_v10 = vpop.f32.mrb[7].mxu1 }
 0x336   : > { %v3566_v13 = vadd.f32 %v1125_v10, %v3555_v35 }
 0x337   : > { %v3568_v31 = vpack.c.bf16 %v1124_v30, %v1120_v29 }
 0x338   : > { %v1206_v49 = vpack.c.bf16 %v3566_v13, %v3561_v41 }
 0x339   : > { %1215 = vrot.lane.b32.xlu0 %v3568_v31, %s3062_s22 }
 0x33a   : > { %v1129_v34 = vpop.f32.mrb[8].mxu1 }
 0x33b   : > { %v1131_v7 = vpop.f32.mrb[9].mxu1  ;;  %v1130_v17 = vadd.f32 %v1129_v34, %v3558_v6 }
 0x33c   : > { %v1132_v36 = vadd.f32 %v1131_v7, %v3555_v35  ;;  %v1133_v37 = vpop.f32.mrb[10].mxu1 }
 0x33d   : > { %v1134_v24 = vadd.f32 %v1133_v37, %v3558_v6  ;;  %v1135_v14 = vpop.f32.mrb[11].mxu1 }
 0x33e   : > { %v1136_v42 = vadd.f32 %v1135_v14, %v3555_v35 }
 0x33f   : > { %v3578_v15 = vpack.c.bf16 %v1134_v24, %v1130_v17 }
 0x340   : > { %v1207_v43 = vpack.c.bf16 %v1136_v42, %v1132_v36 }
 0x341   : > { %1265 = vrot.lane.b32.xlu0 %v3578_v15, %s3062_s22 }
 0x342   : > { %v1139_v18 = vpop.f32.mrb[12].mxu1  ;;  %2667 = vmatpush3.bf16.msra.mxu1 %v1207_v43 }
 0x343   : > { %v1141_v19 = vpop.f32.mrb[13].mxu1  ;;  %2678 = vmatprep.subr.bf16.mxu1 %v3060_v40  ;;  %v1140_v45 = vadd.f32 %v1139_v18, %v3558_v6 }
 0x344   : > { %v3584_v20 = vadd.f32 %v1141_v19, %v3555_v35  ;;  %v1143_v44 = vpop.f32.mrb[14].mxu1 }
 0x345   : > { %v1144_v46 = vadd.f32 %v1143_v44, %v3558_v6  ;;  %v1145_v12 = vpop.f32.mrb[15].mxu1 }
 0x346   : > { %v3589_v47 = vadd.f32 %v1145_v12, %v3555_v35 }
 0x347   : > { %v3591_v25 = vpack.c.bf16 %v1144_v46, %v1140_v45 }
 0x348   : > { %v1208_v48 = vpack.c.bf16 %v3589_v47, %v3584_v20 }
 0x349   : > { %1315 = vrot.lane.b32.xlu1 %v3591_v25, %s3062_s22 }
 0x34a   : > { %v1149_v26 = vpop.f32.mrb[16].mxu1 }
 0x34b   : > { %v1151_v50 = vpop.f32.mrb[17].mxu1  ;;  %v1150_v51 = vadd.f32 %v1149_v26, %v3558_v6 }
 0x34c   : > { %v3598_v27 = vadd.f32 %v1151_v50, %v3555_v35  ;;  %v1153_v11 = vpop.f32.mrb[18].mxu1 }
 0x34d   : > { %v1154_v52 = vadd.f32 %v1153_v11, %v3558_v6  ;;  %v1155_v53 = vpop.f32.mrb[19].mxu1 }
 0x34e   : > { %v3603_v54 = vadd.f32 %v1155_v53, %v3555_v35 }
 0x34f   : > { %v3605_v55 = vpack.c.bf16 %v1154_v52, %v1150_v51 }
 0x350   : > { %v1209_v56 = vpack.c.bf16 %v3603_v54, %v3598_v27 }
 0x351   : > { %1365 = vrot.lane.b32.xlu1 %v3605_v55, %s3062_s22 }
 0x352   : > { %v1159_v58 = vpop.f32.mrb[20].mxu1 }
 0x353   : > { %v1161_v59 = vpop.f32.mrb[21].mxu1  ;;  %v1160_v62 = vadd.f32 %v1159_v58, %v3558_v6 }
 0x354   : > { %v3612_v60 = vadd.f32 %v1161_v59, %v3555_v35  ;;  %v1163_v61 = vpop.f32.mrb[22].mxu1 }
 0x355   : > { %v1164_v63 = vadd.f32 %v1163_v61, %v3558_v6  ;;  %v1165_v0 = vpop.f32.mrb[23].mxu1 }
 0x356   : > { %v3617_v1 = vadd.f32 %v1165_v0, %v3555_v35 }
 0x357   : > { %v3619_v2 = vpack.c.bf16 %v1164_v63, %v1160_v62 }
 0x358   : > { %v1210_v32 = vpack.c.bf16 %v3617_v1, %v3612_v60 }
 0x359   : > { %1415 = vrot.lane.b32.xlu0 %v3619_v2, %s3062_s22 }
 0x35a   : > { %v1169_v3 = vpop.f32.mrb[24].mxu1 }
 0x35b   : > { %v1171_v33 = vpop.f32.mrb[25].mxu1  ;;  %v1170_v5 = vadd.f32 %v1169_v3, %v3558_v6 }
 0x35c   : > { %v3626_v4 = vadd.f32 %v1171_v33, %v3555_v35  ;;  %v1173_v8 = vpop.f32.mrb[26].mxu1 }
 0x35d   : > { %v1174_v16 = vadd.f32 %v1173_v8, %v3558_v6  ;;  %v1175_v21 = vpop.f32.mrb[27].mxu1 }
 0x35e   : > { %v3631_v38 = vadd.f32 %v1175_v21, %v3555_v35 }
 0x35f   : > { %v1203_v39 = vpack.c.bf16 %v1174_v16, %v1170_v5 }
 0x360   : > { %v1211_v57 = vpack.c.bf16 %v3631_v38, %v3626_v4 }
 0x361   : > { %1465 = vrot.lane.b32.xlu1 %v1203_v39, %s3062_s22 }
 0x362   : > { %v1179_v9 = vpop.f32.mrb[28].mxu1 }
 0x363   : > { %v1181_v22 = vpop.f32.mrb[29].mxu1  ;;  %v1180_v29 = vadd.f32 %v1179_v9, %v3558_v6 }
 0x364   : > { %v3637_v23 = vadd.f32 %v1181_v22, %v3555_v35  ;;  %v1183_v28 = vpop.f32.mrb[30].mxu1 }
 0x365   : > { %v1184_v30 = vadd.f32 %v1183_v28, %v3558_v6  ;;  %v1185_v10 = vpop.f32.mrb[31].mxu1 }
 0x366   : > { %v3642_v34 = vadd.f32 %v1185_v10, %v3555_v35 }
 0x367   : > { %v1204_v7 = vpack.c.bf16 %v1184_v30, %v1180_v29 }
 0x368   : > { %v1212_v36 = vpack.c.bf16 %v3642_v34, %v3637_v23 }
 0x369   : > { %1515 = vrot.lane.b32.xlu0 %v1204_v7, %s3062_s22 }
 0x36a   : > { %v1189_v37 = vpop.f32.mrb[32].mxu1 }
 0x36b   : > { %v1191_v17 = vpop.f32.mrb[33].mxu1  ;;  %v1190_v42 = vadd.f32 %v1189_v37, %v3558_v6 }
 0x36c   : > { %v3648_v24 = vadd.f32 %v1191_v17, %v3555_v35  ;;  %v1193_v14 = vpop.f32.mrb[34].mxu1 }
 0x36d   : > { %v1194_v43 = vadd.f32 %v1193_v14, %v3558_v6  ;;  %v1195_v18 = vpop.f32.mrb[35].mxu1 }
 0x36e   : > { %v3653_v19 = vadd.f32 %v1195_v18, %v3555_v35 }
 0x36f   : > { %v1205_v44 = vpack.c.bf16 %v1194_v43, %v1190_v42 }
 0x370   : > { %v1213_v45 = vpack.c.bf16 %v3653_v19, %v3648_v24  ;;  %v2837_v19 = vld [vmem:[#allocation5 + $0x8] sm:$0xff]  }
 0x371   : > { %1565 = vrot.lane.b32.xlu1 %v1205_v44, %s3062_s22  ;;  %s2986_s22 = scalar_lea.vmem %s2985_s26, 4096 }
 0x372   : > { %p2988_p13 = scmp.lt.s32.totalorder %s2986_s22, %s2980_s14 }
 0x374   : > { %p2989_p3 = por %p2988_p13, %p2987_p10 }
 0x376   : > { %p2990_p7 = pnand %p2989_p3, %p2983_p8 }
 0x3ab   : > { %v1216_v46 = vpop.permute.xlu0 %1215 }
 0x3ac   : > { %v1221_v12 = vsel %vm386_vm0, %v1216_v46, 0 }
 0x3ad   : > { %2613 = vmatpush3.bf16.xpose.msra.mxu0 %v1221_v12 }
 0x3ae   : > { %2618 = vmatprep.subr.bf16.mxu0 %v3060_v40 }
 0x3b3   : > { %v1266_v26 = vpop.permute.xlu0 %1265 }
 0x3b4   : > { %v1271_v50 = vsel %vm386_vm0, %v1266_v26, 0  ;;  %2615 = vmatmul.mubr.msk.bf16.vlgmr.msra.gmra.mrb[0].mxu0 %vm386_vm0, %v3568_v31 }
 0x3b5   : > { %2619 = vmatpush3.bf16.xpose.msra.mxu0 %v1271_v50  ;;  %2620 = vmatprep.mubr.msk.bf16.mxu0 %vm3061_vm9, %v3060_v40 }
 0x3b6   : > { %2624 = vmatprep.subr.bf16.mxu0 %v3060_v40 }
 0x3bb   : > { %v1316_v35 = vpop.permute.xlu1 %1315 }
 0x3bc   : > { %v1321_v6 = vsel %vm386_vm0, %v1316_v35, 0  ;;  %2621 = vmatmul.mubr.msk.bf16.vlgmr.msra.gmra.mrb[4].mxu0 %vm386_vm0, %v3578_v15 }
 0x3bd   : > { %2625 = vmatpush3.bf16.xpose.msra.mxu0 %v1321_v6  ;;  %2626 = vmatprep.mubr.msk.bf16.mxu0 %vm3061_vm9, %v3060_v40 }
 0x3be   : > { %2630 = vmatprep.subr.bf16.mxu0 %v3060_v40 }
 0x3c3   : > { %v1366_v11 = vpop.permute.xlu1 %1365 }
 0x3c4   : > { %v1371_v31 = vsel %vm386_vm0, %v1366_v11, 0  ;;  %2627 = vmatmul.mubr.msk.bf16.vlgmr.msra.gmra.mrb[8].mxu0 %vm386_vm0, %v3591_v25 }
 0x3c5   : > { %2631 = vmatpush3.bf16.xpose.msra.mxu0 %v1371_v31  ;;  %2632 = vmatprep.mubr.msk.bf16.mxu0 %vm3061_vm9, %v3060_v40 }
 0x3c6   : > { %2636 = vmatprep.subr.bf16.mxu0 %v3060_v40 }
 0x3cb   : > { %v1416_v51 = vpop.permute.xlu0 %1415 }
 0x3cc   : > { %v1421_v15 = vsel %vm386_vm0, %v1416_v51, 0  ;;  %2633 = vmatmul.mubr.msk.bf16.vlgmr.msra.gmra.mrb[12].mxu0 %vm386_vm0, %v3605_v55 }
 0x3cd   : > { %2637 = vmatpush3.bf16.xpose.msra.mxu0 %v1421_v15  ;;  %2638 = vmatprep.mubr.msk.bf16.mxu0 %vm3061_vm9, %v3060_v40 }
 0x3ce   : > { %2642 = vmatprep.subr.bf16.mxu0 %v3060_v40 }
 0x3d3   : > { %v1466_v52 = vpop.permute.xlu1 %1465 }
 0x3d4   : > { %v1471_v25 = vsel %vm386_vm0, %v1466_v52, 0  ;;  %2639 = vmatmul.mubr.msk.bf16.vlgmr.msra.gmra.mrb[16].mxu0 %vm386_vm0, %v3619_v2 }
 0x3d5   : > { %2643 = vmatpush3.bf16.xpose.msra.mxu0 %v1471_v25  ;;  %2644 = vmatprep.mubr.msk.bf16.mxu0 %vm3061_vm9, %v3060_v40 }
 0x3d6   : > { %2648 = vmatprep.subr.bf16.mxu0 %v3060_v40 }
 0x3db   : > { %v1516_v53 = vpop.permute.xlu0 %1515 }
 0x3dc   : > { %v1521_v55 = vsel %vm386_vm0, %v1516_v53, 0  ;;  %2645 = vmatmul.mubr.msk.bf16.vlgmr.msra.gmra.mrb[20].mxu0 %vm386_vm0, %v1203_v39 }
 0x3dd   : > { %2649 = vmatpush3.bf16.xpose.msra.mxu0 %v1521_v55  ;;  %2650 = vmatprep.mubr.msk.bf16.mxu0 %vm3061_vm9, %v3060_v40 }
 0x3de   : > { %2654 = vmatprep.subr.bf16.mxu0 %v3060_v40 }
 0x3e3   : > { %v1566_v58 = vpop.permute.xlu1 %1565 }
 0x3e4   : > { %v1571_v59 = vsel %vm386_vm0, %v1566_v58, 0  ;;  %2651 = vmatmul.mubr.msk.bf16.vlgmr.msra.gmra.mrb[24].mxu0 %vm386_vm0, %v1204_v7 }
 0x3e5   : > { %2655 = vmatpush3.bf16.xpose.msra.mxu0 %v1571_v59  ;;  %2656 = vmatprep.mubr.msk.bf16.mxu0 %vm3061_vm9, %v3060_v40 }
 0x3e6   : > { %2660 = vmatprep.subr.bf16.mxu0 %v3060_v40 }
 0x3ec   : > { %2657 = vmatmul.mubr.msk.bf16.vlgmr.msra.gmra.mrb[28].mxu0 %vm386_vm0, %v1205_v44 }
 0x3ed   : > { %2661 = vmatpush3.bf16.msra.mxu0 %v1206_v49  ;;  %2662 = vmatprep.mubr.msk.bf16.mxu0 %vm3061_vm9, %v3060_v40 }
 0x3ee   : > { %2672 = vmatprep.subr.bf16.mxu0 %v3060_v40 }
 0x487   : > { %v3707_v61 = vpop.f32.mrb[0].mxu0 }
 0x488   : > { %v2616_v62 = vpop.f32.mrb[1].mxu0  ;;  %v1615_v63 = vsel %vm1614_vm10, %v3707_v61, -inf }
 0x489   : > { %v3711_v0 = vpop.f32.mrb[2].mxu0  ;;  %1616 = vmax.xlane.f32.xlu0 %v1615_v63 }
 0x48a   : > { %v2617_v2 = vpop.f32.mrb[3].mxu0  ;;  %v1618_v41 = vsel %vm1614_vm10, %v3711_v0, -inf }
 0x48b   : > { %1619 = vmax.xlane.f32.xlu1 %v1618_v41 }
 0x48f   : > { %v3715_v13 = vpop.f32.mrb[4].mxu0 }
 0x490   : > { %v2622_v49 = vpop.f32.mrb[5].mxu0  ;;  %v1621_v3 = vsel %vm1614_vm10, %v3715_v13, -inf }
 0x491   : > { %v3719_v33 = vpop.f32.mrb[6].mxu0  ;;  %1622 = vmax.xlane.f32.xlu0 %v1621_v3 }
 0x492   : > { %v2623_v8 = vpop.f32.mrb[7].mxu0  ;;  %v1624_v5 = vsel %vm1614_vm10, %v3719_v33, -inf }
 0x495   : > { %1625 = vmax.xlane.f32.xlu0 %v1624_v5 }
 0x497   : > { %v3723_v16 = vpop.f32.mrb[8].mxu0 }
 0x498   : > { %v2628_v21 = vpop.f32.mrb[9].mxu0  ;;  %v1627_v39 = vsel %vm1614_vm10, %v3723_v16, -inf }
 0x499   : > { %v3727_v9 = vpop.f32.mrb[10].mxu0  ;;  %1628 = vmax.xlane.f32.xlu1 %v1627_v39 }
 0x49a   : > { %v2629_v22 = vpop.f32.mrb[11].mxu0  ;;  %v1630_v28 = vsel %vm1614_vm10, %v3727_v9, -inf }
 0x49b   : > { %1631 = vmax.xlane.f32.xlu0 %v1630_v28 }
 0x49f   : > { %v3731_v29 = vpop.f32.mrb[12].mxu0 }
 0x4a0   : > { %v2634_v30 = vpop.f32.mrb[13].mxu0  ;;  %v1633_v10 = vsel %vm1614_vm10, %v3731_v29, -inf }
 0x4a1   : > { %v3735_v7 = vpop.f32.mrb[14].mxu0  ;;  %1634 = vmax.xlane.f32.xlu1 %v1633_v10 }
 0x4a2   : > { %v2635_v37 = vpop.f32.mrb[15].mxu0  ;;  %v1636_v17 = vsel %vm1614_vm10, %v3735_v7, -inf }
 0x4a3   : > { %1637 = vmax.xlane.f32.xlu0 %v1636_v17 }
 0x4a7   : > { %v3739_v14 = vpop.f32.mrb[16].mxu0 }
 0x4a8   : > { %v2640_v42 = vpop.f32.mrb[17].mxu0  ;;  %v1639_v43 = vsel %vm1614_vm10, %v3739_v14, -inf }
 0x4a9   : > { %v3743_v18 = vpop.f32.mrb[18].mxu0  ;;  %1640 = vmax.xlane.f32.xlu1 %v1639_v43 }
 0x4aa   : > { %v2641_v44 = vpop.f32.mrb[19].mxu0  ;;  %v1642_v46 = vsel %vm1614_vm10, %v3743_v18, -inf }
 0x4ab   : > { %1643 = vmax.xlane.f32.xlu0 %v1642_v46 }
 0x4af   : > { %v3747_v12 = vpop.f32.mrb[20].mxu0 }
 0x4b0   : > { %v2646_v26 = vpop.f32.mrb[21].mxu0  ;;  %v1645_v50 = vsel %vm1614_vm10, %v3747_v12, -inf }
 0x4b1   : > { %v3751_v35 = vpop.f32.mrb[22].mxu0  ;;  %1646 = vmax.xlane.f32.xlu1 %v1645_v50 }
 0x4b2   : > { %v2647_v6 = vpop.f32.mrb[23].mxu0  ;;  %v1648_v11 = vsel %vm1614_vm10, %v3751_v35, -inf }
 0x4b3   : > { %1649 = vmax.xlane.f32.xlu0 %v1648_v11 }
 0x4b7   : > { %v3755_v31 = vpop.f32.mrb[24].mxu0 }
 0x4b8   : > { %v2652_v51 = vpop.f32.mrb[25].mxu0  ;;  %v1651_v15 = vsel %vm1614_vm10, %v3755_v31, -inf }
 0x4b9   : > { %v3759_v52 = vpop.f32.mrb[26].mxu0  ;;  %1652 = vmax.xlane.f32.xlu1 %v1651_v15 }
 0x4ba   : > { %v2653_v25 = vpop.f32.mrb[27].mxu0  ;;  %v1654_v53 = vsel %vm1614_vm10, %v3759_v52, -inf }
 0x4bb   : > { %1655 = vmax.xlane.f32.xlu0 %v1654_v53 }
 0x4bf   : > { %v3763_v55 = vpop.f32.mrb[28].mxu0 }
 0x4c0   : > { %v2658_v58 = vpop.f32.mrb[29].mxu0  ;;  %v1657_v59 = vsel %vm1614_vm10, %v3763_v55, -inf }
 0x4c1   : > { %1658 = vmax.xlane.f32.xlu1 %v1657_v59  ;;  %v3767_v62 = vpop.f32.mrb[30].mxu0 }
 0x4c2   : > { %v2659_v63 = vpop.f32.mrb[31].mxu0  ;;  %v1660_v2 = vsel %vm1614_vm10, %v3767_v62, -inf }
 0x4c3   : > { %1661 = vmax.xlane.f32.xlu0 %v1660_v2 }
 0x516   : > { %v1617_v41 = vpop.xlane.xlu0 %1616 }
 0x517   : > { %v1663_v49 = vsub.f32 %v3707_v61, %v1617_v41 }
 0x518   : > { %v1620_v3 = vpop.xlane.xlu1 %1619 }
 0x519   : > { %v1679_v8 = vmul.f32 1.442695, %v1663_v49  ;;  %v1664_v5 = vsub.f32 %v3711_v0, %v1620_v3 }
 0x51b   : > { %2842 = vpow2.f32 %v1679_v8  ;;  %v1681_v21 = vmul.f32 1.442695, %v1664_v5 }
 0x51d   : > { %2844 = vpow2.f32 %v1681_v21 }
 0x51e   : > { %v1623_v39 = vpop.xlane.xlu0 %1622 }
 0x51f   : > { %v1665_v22 = vsub.f32 %v3715_v13, %v1623_v39 }
 0x521   : > { %v1683_v28 = vmul.f32 1.442695, %v1665_v22 }
 0x522   : > { %v1626_v30 = vpop.xlane.xlu0 %1625 }
 0x523   : > { %2846 = vpow2.f32 %v1683_v28  ;;  %v1666_v10 = vsub.f32 %v3719_v33, %v1626_v30 }
 0x525   : > { %v3775_v37 = vpop.eup %2842  ;;  %v1685_v17 = vmul.f32 1.442695, %v1666_v10 }
 0x526   : > { %v1629_v42 = vpop.xlane.xlu1 %1628  ;;  %v1711_v61 = vsel %vm1614_vm10, %v3775_v37, 0.0 }
 0x527   : > { %v3779_v43 = vpop.eup %2844  ;;  %2848 = vpow2.f32 %v1685_v17  ;;  %v1667_v0 = vsub.f32 %v3723_v16, %v1629_v42  ;;  %1712 = vadd.xlane.f32.xlu1 %v1711_v61 }
 0x528   : > { %v1632_v44 = vpop.xlane.xlu0 %1631  ;;  %v1714_v13 = vsel %vm1614_vm10, %v3779_v43, 0.0 }
 0x529   : > { %v1687_v46 = vmul.f32 1.442695, %v1667_v0  ;;  %v1668_v33 = vsub.f32 %v3727_v9, %v1632_v44  ;;  %1715 = vadd.xlane.f32.xlu0 %v1714_v13 }
 0x52b   : > { %2850 = vpow2.f32 %v1687_v46  ;;  %v1689_v26 = vmul.f32 1.442695, %v1668_v33 }
 0x52d   : > { %v3785_v50 = vpop.eup %2846  ;;  %2852 = vpow2.f32 %v1689_v26 }
 0x52e   : > { %v1635_v6 = vpop.xlane.xlu1 %1634  ;;  %v1717_v11 = vsel %vm1614_vm10, %v3785_v50, 0.0 }
 0x52f   : > { %v1669_v16 = vsub.f32 %v3731_v29, %v1635_v6  ;;  %1718 = vadd.xlane.f32.xlu1 %v1717_v11 }
 0x530   : > { %v1638_v51 = vpop.xlane.xlu0 %1637 }
 0x531   : > { %v3790_v15 = vpop.eup %2848  ;;  %v1691_v25 = vmul.f32 1.442695, %v1669_v16  ;;  %v1670_v53 = vsub.f32 %v3735_v7, %v1638_v51 }
 0x532   : > { %v1720_v9 = vsel %vm1614_vm10, %v3790_v15, 0.0 }
 0x533   : > { %2854 = vpow2.f32 %v1691_v25  ;;  %v1693_v58 = vmul.f32 1.442695, %v1670_v53  ;;  %1721 = vadd.xlane.f32.xlu0 %v1720_v9 }
 0x535   : > { %v3795_v59 = vpop.eup %2850  ;;  %2856 = vpow2.f32 %v1693_v58 }
 0x536   : > { %v1641_v63 = vpop.xlane.xlu1 %1640  ;;  %v1723_v29 = vsel %vm1614_vm10, %v3795_v59, 0.0 }
 0x537   : > { %v3799_v2 = vpop.eup %2852  ;;  %v1671_v41 = vsub.f32 %v3739_v14, %v1641_v63  ;;  %1724 = vadd.xlane.f32.xlu1 %v1723_v29 }
 0x538   : > { %v1644_v49 = vpop.xlane.xlu0 %1643  ;;  %v1726_v7 = vsel %vm1614_vm10, %v3799_v2, 0.0 }
 0x539   : > { %v1695_v3 = vmul.f32 1.442695, %v1671_v41  ;;  %v1672_v8 = vsub.f32 %v3743_v18, %v1644_v49  ;;  %1727 = vadd.xlane.f32.xlu0 %v1726_v7 }
 0x53b   : > { %2858 = vpow2.f32 %v1695_v3  ;;  %v1697_v5 = vmul.f32 1.442695, %v1672_v8 }
 0x53d   : > { %v3805_v21 = vpop.eup %2854  ;;  %2860 = vpow2.f32 %v1697_v5 }
 0x53e   : > { %v1647_v39 = vpop.xlane.xlu1 %1646  ;;  %v1729_v22 = vsel %vm1614_vm10, %v3805_v21, 0.0 }
 0x53f   : > { %v3809_v28 = vpop.eup %2856  ;;  %v1673_v14 = vsub.f32 %v3747_v12, %v1647_v39  ;;  %1730 = vadd.xlane.f32.xlu1 %v1729_v22 }
 0x540   : > { %v1650_v30 = vpop.xlane.xlu0 %1649  ;;  %v1732_v10 = vsel %vm1614_vm10, %v3809_v28, 0.0 }
 0x541   : > { %v1699_v18 = vmul.f32 1.442695, %v1673_v14  ;;  %v1674_v17 = vsub.f32 %v3751_v35, %v1650_v30  ;;  %1733 = vadd.xlane.f32.xlu0 %v1732_v10 }
 0x543   : > { %2862 = vpow2.f32 %v1699_v18  ;;  %v1701_v42 = vmul.f32 1.442695, %v1674_v17 }
 0x545   : > { %v3815_v61 = vpop.eup %2858  ;;  %2864 = vpow2.f32 %v1701_v42 }
 0x546   : > { %v1653_v0 = vpop.xlane.xlu1 %1652  ;;  %v1735_v44 = vsel %vm1614_vm10, %v3815_v61, 0.0 }
 0x547   : > { %v3819_v13 = vpop.eup %2860  ;;  %v1675_v12 = vsub.f32 %v3755_v31, %v1653_v0  ;;  %1736 = vadd.xlane.f32.xlu1 %v1735_v44 }
 0x548   : > { %v1656_v46 = vpop.xlane.xlu0 %1655  ;;  %v1738_v33 = vsel %vm1614_vm10, %v3819_v13, 0.0 }
 0x549   : > { %v1703_v35 = vmul.f32 1.442695, %v1675_v12  ;;  %v1676_v26 = vsub.f32 %v3759_v52, %v1656_v46  ;;  %1739 = vadd.xlane.f32.xlu0 %v1738_v33 }
 0x54b   : > { %2866 = vpow2.f32 %v1703_v35  ;;  %v1705_v6 = vmul.f32 1.442695, %v1676_v26 }
 0x54d   : > { %v3825_v11 = vpop.eup %2862  ;;  %2868 = vpow2.f32 %v1705_v6 }
 0x54e   : > { %v1659_v16 = vpop.xlane.xlu1 %1658  ;;  %v1741_v51 = vsel %vm1614_vm10, %v3825_v11, 0.0 }
 0x54f   : > { %v3829_v25 = vpop.eup %2864  ;;  %v1677_v31 = vsub.f32 %v3763_v55, %v1659_v16  ;;  %1742 = vadd.xlane.f32.xlu1 %v1741_v51 }
 0x550   : > { %v1662_v53 = vpop.xlane.xlu0 %1661  ;;  %v1744_v9 = vsel %vm1614_vm10, %v3829_v25, 0.0 }
 0x551   : > { %v1707_v52 = vmul.f32 1.442695, %v1677_v31  ;;  %v1678_v58 = vsub.f32 %v3767_v62, %v1662_v53  ;;  %1745 = vadd.xlane.f32.xlu0 %v1744_v9  ;;  %v2836_v9 = vld [vmem:[#allocation5] sm:$0xff]  }
 0x553   : > { %2870 = vpow2.f32 %v1707_v52  ;;  %v1709_v63 = vmul.f32 1.442695, %v1678_v58 }
 0x555   : > { %v3835_v29 = vpop.eup %2866  ;;  %2872 = vpow2.f32 %v1709_v63 }
 0x556   : > { %v1747_v41 = vsel %vm1614_vm10, %v3835_v29, 0.0 }
 0x557   : > { %v3839_v49 = vpop.eup %2868  ;;  %1748 = vadd.xlane.f32.xlu1 %v1747_v41 }
 0x558   : > { %v1750_v55 = vsel %vm1614_vm10, %v3839_v49, 0.0 }
 0x559   : > { %1751 = vadd.xlane.f32.xlu0 %v1750_v55 }
 0x55d   : > { %v3843_v7 = vpop.eup %2870 }
 0x55e   : > { %v1753_v62 = vsel %vm1614_vm10, %v3843_v7, 0.0 }
 0x55f   : > { %v3847_v3 = vpop.eup %2872  ;;  %1754 = vadd.xlane.f32.xlu1 %v1753_v62 }
 0x560   : > { %v1756_v8 = vsel %vm1614_vm10, %v3847_v3, 0.0 }
 0x561   : > { %1757 = vadd.xlane.f32.xlu0 %v1756_v8 }
 0x5b4   : > { %v1713_v5 = vpop.xlane.xlu1 %1712 }
 0x5b5   : > { %2874 = vrcp.f32 %v1713_v5 }
 0x5b6   : > { %v1716_v39 = vpop.xlane.xlu0 %1715 }
 0x5b7   : > { %2876 = vrcp.f32 %v1716_v39 }
 0x5bc   : > { %v1719_v22 = vpop.xlane.xlu1 %1718 }
 0x5bd   : > { %2878 = vrcp.f32 %v1719_v22 }
 0x5bf   : > { %v2875_v14 = vpop.eup %2874 }
 0x5c0   : > { %v1722_v30 = vpop.xlane.xlu0 %1721  ;;  %v1775_v18 = vmul.f32 %v2875_v14, %v3775_v37 }
 0x5c1   : > { %v2877_v10 = vpop.eup %2876  ;;  %2880 = vrcp.f32 %v1722_v30 }
 0x5c2   : > { %v1776_v17 = vmul.f32 %v2877_v10, %v3779_v43 }
 0x5c4   : > { %v1725_v42 = vpop.xlane.xlu1 %1724  ;;  %v1791_v0 = vpack.c.bf16 %v1776_v17, %v1775_v18 }
 0x5c5   : > { %2882 = vrcp.f32 %v1725_v42 }
 0x5c6   : > { %v1728_v44 = vpop.xlane.xlu0 %1727  ;;  %2663 = vmatmul.mubr.msk.bf16.vlgmr.msra.gmra.mrb[32].mxu0 %vm1614_vm10, %v1791_v0 }
 0x5c7   : > { %2884 = vrcp.f32 %v1728_v44  ;;  %2673 = vmatpush3.bf16.msra.mxu0 %v1208_v48  ;;  %2674 = vmatprep.mubr.msk.bf16.mxu0 %vm3061_vm9, %v3060_v40  ;;  %v2879_v12 = vpop.eup %2878 }
 0x5c8   : > { %2684 = vmatprep.subr.bf16.mxu0 %v3060_v40  ;;  %v1777_v43 = vmul.f32 %v2879_v12, %v3785_v50 }
 0x5cb   : > { %v2881_v37 = vpop.eup %2880 }
 0x5cc   : > { %v1778_v46 = vmul.f32 %v2881_v37, %v3790_v15  ;;  %v1731_v33 = vpop.xlane.xlu1 %1730 }
 0x5cd   : > { %2886 = vrcp.f32 %v1731_v33 }
 0x5ce   : > { %v1792_v35 = vpack.c.bf16 %v1778_v46, %v1777_v43  ;;  %v1734_v26 = vpop.xlane.xlu0 %1733 }
 0x5cf   : > { %v2883_v6 = vpop.eup %2882  ;;  %2888 = vrcp.f32 %v1734_v26 }
 0x5d0   : > { %2669 = vmatmul.mubr.msk.bf16.vlgmr.msra.gmra.mrb[36].mxu1 %vm1614_vm10, %v1792_v35  ;;  %v1779_v47 = vmul.f32 %v2883_v6, %v3795_v59 }
 0x5d1   : > { %v2885_v20 = vpop.eup %2884  ;;  %2679 = vmatpush3.bf16.msra.mxu1 %v1209_v56  ;;  %2680 = vmatprep.mubr.msk.bf16.mxu1 %vm3061_vm9, %v3060_v40 }
 0x5d2   : > { %v1780_v48 = vmul.f32 %v2885_v20, %v3799_v2  ;;  %2690 = vmatprep.subr.bf16.mxu1 %v3060_v40 }
 0x5d4   : > { %v1737_v50 = vpop.xlane.xlu1 %1736  ;;  %v1793_v15 = vpack.c.bf16 %v1780_v48, %v1779_v47 }
 0x5d5   : > { %2890 = vrcp.f32 %v1737_v50 }
 0x5d6   : > { %v1740_v16 = vpop.xlane.xlu0 %1739  ;;  %2675 = vmatmul.mubr.msk.bf16.vlgmr.msra.gmra.mrb[36].mxu0 %vm1614_vm10, %v1793_v15 }
 0x5d7   : > { %v2887_v51 = vpop.eup %2886  ;;  %2892 = vrcp.f32 %v1740_v16  ;;  %2685 = vmatpush3.bf16.msra.mxu0 %v1210_v32  ;;  %2686 = vmatprep.mubr.msk.bf16.mxu0 %vm3061_vm9, %v3060_v40 }
 0x5d8   : > { %2696 = vmatprep.subr.bf16.mxu0 %v3060_v40  ;;  %v1781_v54 = vmul.f32 %v2887_v51, %v3805_v21 }
 0x5d9   : > { %v2889_v27 = vpop.eup %2888 }
 0x5da   : > { %v1782_v56 = vmul.f32 %v2889_v27, %v3809_v28 }
 0x5dc   : > { %v1743_v59 = vpop.xlane.xlu1 %1742  ;;  %v1794_v2 = vpack.c.bf16 %v1782_v56, %v1781_v54 }
 0x5dd   : > { %2894 = vrcp.f32 %v1743_v59 }
 0x5de   : > { %v1746_v31 = vpop.xlane.xlu0 %1745  ;;  %2681 = vmatmul.mubr.msk.bf16.vlgmr.msra.gmra.mrb[40].mxu1 %vm1614_vm10, %v1794_v2 }
 0x5df   : > { %v2891_v53 = vpop.eup %2890  ;;  %2896 = vrcp.f32 %v1746_v31  ;;  %2691 = vmatpush3.bf16.msra.mxu1 %v1211_v57  ;;  %2692 = vmatprep.mubr.msk.bf16.mxu1 %vm3061_vm9, %v3060_v40 }
 0x5e0   : > { %2702 = vmatprep.subr.bf16.mxu1 %v3060_v40  ;;  %v1783_v1 = vmul.f32 %v2891_v53, %v3815_v61 }
 0x5e1   : > { %v2893_v60 = vpop.eup %2892 }
 0x5e2   : > { %v1784_v32 = vmul.f32 %v2893_v60, %v3819_v13 }
 0x5e4   : > { %v1749_v21 = vpop.xlane.xlu1 %1748  ;;  %v1795_v28 = vpack.c.bf16 %v1784_v32, %v1783_v1 }
 0x5e5   : > { %2898 = vrcp.f32 %v1749_v21  ;;  %v3920_v21 = vld [vmem:[%s4049_s8] ss:$0 sm:$0xff] }
 0x5e6   : > { %v1752_v52 = vpop.xlane.xlu0 %1751  ;;  %2687 = vmatmul.mubr.msk.bf16.vlgmr.msra.gmra.mrb[40].mxu0 %vm1614_vm10, %v1795_v28 }
 0x5e7   : > { %v2895_v58 = vpop.eup %2894  ;;  %2900 = vrcp.f32 %v1752_v52  ;;  %2697 = vmatpush3.bf16.msra.mxu0 %v1212_v36  ;;  %2698 = vmatprep.mubr.msk.bf16.mxu0 %vm3061_vm9, %v3060_v40 }
 0x5e8   : > { %2708 = vmatprep.subr.bf16.mxu0 %v2836_v9  ;;  %v1785_v38 = vmul.f32 %v2895_v58, %v3825_v11 }
 0x5e9   : > { %v2897_v4 = vpop.eup %2896 }
 0x5ea   : > { %v1786_v57 = vmul.f32 %v2897_v4, %v3829_v25 }
 0x5ec   : > { %v1755_v61 = vpop.xlane.xlu1 %1754  ;;  %v1796_v13 = vpack.c.bf16 %v1786_v57, %v1785_v38  ;;  %v2906_v38 = vld [vmem:[%s3261_s19 + $0x10] sm:$0xff] }
 0x5ed   : > { %2902 = vrcp.f32 %v1755_v61 }
 0x5ee   : > { %v1758_v63 = vpop.xlane.xlu0 %1757  ;;  %2693 = vmatmul.mubr.msk.bf16.vlgmr.msra.gmra.mrb[44].mxu1 %vm1614_vm10, %v1796_v13 }
 0x5ef   : > { %v2899_v41 = vpop.eup %2898  ;;  %2904 = vrcp.f32 %v1758_v63  ;;  %2703 = vmatpush3.bf16.msra.mxu1 %v1213_v45  ;;  %2704 = vmatprep.mubr.msk.bf16.mxu1 %vm3061_vm9, %v3060_v40  ;;  %v2838_v40 = vld [vmem:[#allocation5 + $0x10] sm:$0xff]   ;;  %v2839_v45 = vld [vmem:[#allocation5 + $0x18] sm:$0xff]   ;;  %v2907_v63 = vld [vmem:[%s3261_s19] sm:$0xff] }
 0x5f0   : > { %v1787_v34 = vmul.f32 %v2899_v41, %v3835_v29 }
 0x5f1   : > { %v2901_v23 = vpop.eup %2900 }
 0x5f2   : > { %v1788_v36 = vmul.f32 %v2901_v23, %v3839_v49 }
 0x5f4   : > { %v1797_v11 = vpack.c.bf16 %v1788_v36, %v1787_v34  ;;  %v2908_v34 = vld [vmem:[%s3261_s19 + $0x18] sm:$0xff] }
 0x5f6   : > { %2699 = vmatmul.mubr.msk.bf16.vlgmr.msra.gmra.mrb[44].mxu0 %vm1614_vm10, %v1797_v11  ;;  %v2909_v11 = vld [vmem:[%s3261_s19 + $0x8] sm:$0xff] }
 0x5f7   : > { %v2903_v25 = vpop.eup %2902  ;;  %2709 = vmatpush3.bf16.msra.mxu0 %v2836_v9 }
 0x5f8   : > { %v1789_v62 = vmul.f32 %v2903_v25, %v3843_v7  ;;  %2710 = vmatprep.subr.bf16.mxu0 %v2837_v19 }
 0x5f9   : > { %v2905_v55 = vpop.eup %2904 }
 0x5fa   : > { %v1790_v8 = vmul.f32 %v2905_v55, %v3847_v3 }
 0x5fb   : > { %2711 = vmatpush3.bf16.msra.mxu0 %v2837_v19 }
 0x5fc   : > { %v1798_v24 = vpack.c.bf16 %v1790_v8, %v1789_v62  ;;  %2712 = vmatprep.subr.bf16.mxu0 %v2838_v40 }
 0x5fe   : > { %2705 = vmatmul.mubr.msk.bf16.vlgmr.msra.gmra.mrb[48].mxu1 %vm1614_vm10, %v1798_v24 }
 0x5ff   : > { %2713 = vmatpush3.bf16.msra.mxu0 %v2838_v40  ;;  %v2910_v40 = vld [vmem:[%s3261_s19 + $0x30] sm:$0xff] }
 0x600   : > { %2714 = vmatprep.subr.bf16.mxu0 %v2839_v45 }
 0x603   : > { %2715 = vmatpush3.bf16.msra.mxu0 %v2839_v45 }
 0x699   : > { %v1836_v29 = vpop.f32.mrb[32].mxu0 }
 0x69a   : > { %v2664_v49 = vpop.f32.mrb[33].mxu0 }
 0x69b   : > { %v1839_v5 = vpop.f32.mrb[34].mxu0 }
 0x69c   : > { %v2151_v39 = vpack.c.bf16 %v1839_v5, %v1836_v29  ;;  %v2665_v22 = vpop.f32.mrb[35].mxu0  ;;  %v2911_v5 = vld [vmem:[%s3261_s19 + $0x20] sm:$0xff] }
 0x69e   : > { %2716 = vmatprep.mubr.msk.bf16.mxu0 %vm386_vm0, %v2151_v39 }
 0x6a3   : > { %v1880_v7 = vpop.f32.mrb[36].mxu1 }
 0x6a4   : > { %v2670_v3 = vpop.f32.mrb[37].mxu1 }
 0x6a5   : > { %v1883_v14 = vpop.f32.mrb[38].mxu1 }
 0x6a6   : > { %v2152_v30 = vpack.c.bf16 %v1883_v14, %v1880_v7  ;;  %v2671_v10 = vpop.f32.mrb[39].mxu1  ;;  %v2912_v7 = vld [vmem:[%s3261_s19 + $0x38] sm:$0xff]  ;;  %v2913_v14 = vld [vmem:[%s3261_s19 + $0x28] sm:$0xff] }
 0x6a8   : > { %2717 = vmatmul.mubr.msk.bf16.vlgmr.msra.gmra.mrb[48].mxu0 %vm386_vm0, %v2152_v30 }
 0x6a9   : > { %v1924_v18 = vpop.f32.mrb[36].mxu0 }
 0x6aa   : > { %v2676_v17 = vpop.f32.mrb[37].mxu0 }
 0x6ab   : > { %v1927_v42 = vpop.f32.mrb[38].mxu0 }
 0x6ac   : > { %v2153_v0 = vpack.c.bf16 %v1927_v42, %v1924_v18  ;;  %v2677_v44 = vpop.f32.mrb[39].mxu0 }
 0x6ad   : > { %v2914_v44 = vld [vmem:[%s3261_s19 + $0x50] sm:$0xff] }
 0x6ae   : > { %2720 = vmatprep.mubr.msk.bf16.mxu0 %vm386_vm0, %v2153_v0 }
 0x6b1   : > { %v1968_v12 = vpop.f32.mrb[40].mxu1 }
 0x6b2   : > { %v2682_v37 = vpop.f32.mrb[41].mxu1 }
 0x6b3   : > { %v1971_v43 = vpop.f32.mrb[42].mxu1 }
 0x6b4   : > { %v2154_v46 = vpack.c.bf16 %v1971_v43, %v1968_v12  ;;  %v2683_v33 = vpop.f32.mrb[43].mxu1 }
 0x6b6   : > { %2721 = vmatmul.mubr.msk.bf16.gmra.mrb[52].mxu0 %vm386_vm0, %v2154_v46  ;;  %v2915_v46 = vld [vmem:[%s3261_s19 + $0x40] sm:$0xff] }
 0x6b9   : > { %v2012_v35 = vpop.f32.mrb[40].mxu0 }
 0x6ba   : > { %v2688_v26 = vpop.f32.mrb[41].mxu0 }
 0x6bb   : > { %v2015_v6 = vpop.f32.mrb[42].mxu0  ;;  %v2916_v26 = vld [vmem:[%s3261_s19 + $0x58] sm:$0xff] }
 0x6bc   : > { %v2155_v20 = vpack.c.bf16 %v2015_v6, %v2012_v35  ;;  %v2689_v47 = vpop.f32.mrb[43].mxu0 }
 0x6be   : > { %2724 = vmatprep.mubr.msk.bf16.mxu0 %vm386_vm0, %v2155_v20  ;;  %v2917_v20 = vld [vmem:[%s3261_s19 + $0x48] sm:$0xff] }
 0x6c1   : > { %v2056_v48 = vpop.f32.mrb[44].mxu1 }
 0x6c2   : > { %v2694_v50 = vpop.f32.mrb[45].mxu1 }
 0x6c3   : > { %v2059_v15 = vpop.f32.mrb[46].mxu1 }
 0x6c4   : > { %v2156_v16 = vpack.c.bf16 %v2059_v15, %v2056_v48  ;;  %v2695_v51 = vpop.f32.mrb[47].mxu1 }
 0x6c6   : > { %2725 = vmatmul.mubr.msk.bf16.gmra.mrb[56].mxu0 %vm386_vm0, %v2156_v16 }
 0x6c9   : > { %v2100_v27 = vpop.f32.mrb[44].mxu0 }
 0x6ca   : > { %v2700_v54 = vpop.f32.mrb[45].mxu0 }
 0x6cb   : > { %v2103_v56 = vpop.f32.mrb[46].mxu0 }
 0x6cc   : > { %v2157_v59 = vpack.c.bf16 %v2103_v56, %v2100_v27  ;;  %v2701_v2 = vpop.f32.mrb[47].mxu0  ;;  %v2918_v27 = vld [vmem:[%s3261_s19 + $0x70] sm:$0xff] }
 0x6cd   : > { %v2919_v2 = vld [vmem:[%s3261_s19 + $0x60] sm:$0xff] }
 0x6ce   : > { %2728 = vmatprep.mubr.msk.bf16.mxu0 %vm386_vm0, %v2157_v59 }
 0x6d1   : > { %v2144_v31 = vpop.f32.mrb[48].mxu1 }
 0x6d2   : > { %v2706_v53 = vpop.f32.mrb[49].mxu1 }
 0x6d3   : > { %v2147_v60 = vpop.f32.mrb[50].mxu1 }
 0x6d4   : > { %v2158_v1 = vpack.c.bf16 %v2147_v60, %v2144_v31  ;;  %v2707_v32 = vpop.f32.mrb[51].mxu1  ;;  %v2920_v60 = vld [vmem:[%s3261_s19 + $0x78] sm:$0xff] }
 0x6d5   : > { %v2921_v32 = vld [vmem:[%s3261_s19 + $0x68] sm:$0xff] }
 0x6d6   : > { %2729 = vmatmul.mubr.msk.bf16.gmra.mrb[60].mxu0 %vm386_vm0, %v2158_v1 }
 0x77b   : > { %v2718_v28 = vpop.f32.mrb[48].mxu0 }
 0x77c   : > { %v2265_v9 = vadd.f32 %v2718_v28, %v3920_v21  ;;  %v2256_v52 = vpop.f32.mrb[49].mxu0 }
 0x77d   : > { %v2257_v58 = vadd.f32 %v3920_v21, %v2256_v52  ;;  %v2719_v4 = vpop.f32.mrb[50].mxu0 }
 0x77e   : > { %v2321_v57 = vadd.f32 %v2906_v38, %v2265_v9  ;;  %v2268_v61 = vadd.f32 %v2719_v4, %v3920_v21  ;;  %v2259_v13 = vpop.f32.mrb[51].mxu0 }
 0x77f   : > { %v2319_v41 = vadd.f32 %v2907_v63, %v2257_v58  ;;  %v2260_v23 = vadd.f32 %v3920_v21, %v2259_v13 }
 0x780   : > { %2337 = vst.msk [vmem:[%s3930_s15 + $0x10] sm:$0xff] %vm386_vm0, %v2321_v57  ;;  %v2322_v36 = vadd.f32 %v2908_v34, %v2268_v61 }
 0x781   : > { %2335 = vst.msk [vmem:[%s3930_s15] sm:$0xff] %vm386_vm0, %v2319_v41  ;;  %v2320_v25 = vadd.f32 %v2909_v11, %v2260_v23 }
 0x782   : > { %2338 = vst.msk [vmem:[%s3930_s15 + $0x18] sm:$0xff] %vm386_vm0, %v2322_v36 }
 0x783   : > { %2336 = vst.msk [vmem:[%s3930_s15 + $0x8] sm:$0xff] %vm386_vm0, %v2320_v25 }
 0x789   : > { %v2722_v55 = vpop.f32.mrb[52].mxu0 }
 0x78a   : > { %v2281_v62 = vadd.f32 %v2722_v55, %v3920_v21  ;;  %v2272_v8 = vpop.f32.mrb[53].mxu0 }
 0x78b   : > { %v2273_v24 = vadd.f32 %v3920_v21, %v2272_v8  ;;  %v2723_v19 = vpop.f32.mrb[54].mxu0 }
 0x78c   : > { %v2325_v45 = vadd.f32 %v2910_v40, %v2281_v62  ;;  %v2284_v29 = vadd.f32 %v2723_v19, %v3920_v21  ;;  %v2275_v49 = vpop.f32.mrb[55].mxu0 }
 0x78d   : > { %v2323_v39 = vadd.f32 %v2911_v5, %v2273_v24  ;;  %v2276_v22 = vadd.f32 %v3920_v21, %v2275_v49 }
 0x78e   : > { %2341 = vst.msk [vmem:[%s3930_s15 + $0x30] sm:$0xff] %vm386_vm0, %v2325_v45  ;;  %v2326_v3 = vadd.f32 %v2912_v7, %v2284_v29 }
 0x78f   : > { %2339 = vst.msk [vmem:[%s3930_s15 + $0x20] sm:$0xff] %vm386_vm0, %v2323_v39  ;;  %v2324_v30 = vadd.f32 %v2913_v14, %v2276_v22 }
 0x790   : > { %2342 = vst.msk [vmem:[%s3930_s15 + $0x38] sm:$0xff] %vm386_vm0, %v2326_v3 }
 0x791   : > { %2340 = vst.msk [vmem:[%s3930_s15 + $0x28] sm:$0xff] %vm386_vm0, %v2324_v30 }
 0x799   : > { %v2726_v10 = vpop.f32.mrb[56].mxu0 }
 0x79a   : > { %v2297_v18 = vadd.f32 %v2726_v10, %v3920_v21  ;;  %v2288_v17 = vpop.f32.mrb[57].mxu0 }
 0x79b   : > { %v2289_v42 = vadd.f32 %v3920_v21, %v2288_v17  ;;  %v2727_v0 = vpop.f32.mrb[58].mxu0 }
 0x79c   : > { %v2329_v12 = vadd.f32 %v2914_v44, %v2297_v18  ;;  %v2300_v37 = vadd.f32 %v2727_v0, %v3920_v21  ;;  %v2291_v43 = vpop.f32.mrb[59].mxu0 }
 0x79d   : > { %v2327_v33 = vadd.f32 %v2915_v46, %v2289_v42  ;;  %v2292_v35 = vadd.f32 %v3920_v21, %v2291_v43 }
 0x79e   : > { %2345 = vst.msk [vmem:[%s3930_s15 + $0x50] sm:$0xff] %vm386_vm0, %v2329_v12  ;;  %v2330_v6 = vadd.f32 %v2916_v26, %v2300_v37 }
 0x79f   : > { %2343 = vst.msk [vmem:[%s3930_s15 + $0x40] sm:$0xff] %vm386_vm0, %v2327_v33  ;;  %v2328_v47 = vadd.f32 %v2917_v20, %v2292_v35 }
 0x7a0   : > { %2346 = vst.msk [vmem:[%s3930_s15 + $0x58] sm:$0xff] %vm386_vm0, %v2330_v6 }
 0x7a1   : > { %2344 = vst.msk [vmem:[%s3930_s15 + $0x48] sm:$0xff] %vm386_vm0, %v2328_v47 }
 0x7a9   : > { %v2730_v48 = vpop.f32.mrb[60].mxu0 }
 0x7aa   : > { %v2313_v50 = vadd.f32 %v2730_v48, %v3920_v21  ;;  %v2304_v15 = vpop.f32.mrb[61].mxu0 }
 0x7ab   : > { %v2305_v16 = vadd.f32 %v3920_v21, %v2304_v15  ;;  %v2731_v51 = vpop.f32.mrb[62].mxu0 }
 0x7ac   : > { %v2333_v54 = vadd.f32 %v2918_v27, %v2313_v50  ;;  %v2316_v56 = vadd.f32 %v2731_v51, %v3920_v21  ;;  %v2307_v59 = vpop.f32.mrb[63].mxu0 }
 0x7ad   : > { %v2331_v31 = vadd.f32 %v2919_v2, %v2305_v16  ;;  %v2308_v53 = vadd.f32 %v3920_v21, %v2307_v59 }
 0x7ae   : > { %2349 = vst.msk [vmem:[%s3930_s15 + $0x70] sm:$0xff] %vm386_vm0, %v2333_v54  ;;  %v2334_v1 = vadd.f32 %v2920_v60, %v2316_v56 }
 0x7af   : > { %2347 = vst.msk [vmem:[%s3930_s15 + $0x60] sm:$0xff] %vm386_vm0, %v2331_v31  ;;  %v2332_v28 = vadd.f32 %v2921_v32, %v2308_v53 }
 0x7b0   : > { %2350 = vst.msk [vmem:[%s3930_s15 + $0x78] sm:$0xff] %vm386_vm0, %v2334_v1 }
 0x7b1   : > { %2348 = vst.msk [vmem:[%s3930_s15 + $0x68] sm:$0xff] %vm386_vm0, %v2332_v28 }
 0x7b2   : > { %2993 = shalt.err (!%p2990_p7)
}
 0x7b3   : > { %s2994_s19 = scalar_lea.hbm %s3988_s25, 2048  ;;  %s2998_s15 = scalar_lea.hbm %s4050_s9, 4096 }
 0x7b4   : > { %p2995_p9 = scmp.ne.s32.totalorder %s3988_s25, %s2994_s19  ;;  %p2999_p5 = scmp.lt.u32.totalorder %s3988_s25, %s4050_s9 }
 0x7b5   : > { %p3000_p11 = scmp.lt.u32.totalorder %s2998_s15, %s2994_s19  ;;  %p3002_p4 = scmp.lt.u32.totalorder %s2994_s19, %s3988_s25 }
 0x7b6   : > { %p2996_p2 = pnand %p2995_p9, %p3207_p12 }
 0x7b7   : > { %p3001_p1 = por %p3000_p11, %p2999_p5 }
 0x7b8   : > { %p2997_p0 = pneg %p2996_p2 }
 0x7b9   : > { %p3003_p6 = por %p3002_p4, %p3001_p1 }
 0x7bb   : > { %p3004_p8 = pnand %p3003_p6, %p2997_p0 }
 0x7bd   : > { %3007 = shalt.err (!%p3004_p8)
}
 0x7be   : > { %s3064_s13 = smov 128   ;;  %s3065_s14 = smov 8  }
 0x7bf   : > { %2762 = dma.vmem_to_hbm [thread:$0]  (%p3207_p12), %s3990_s16, 2048, %s3988_s25, %s2352_s27, %s3064_s13, %s3064_s13, %s3065_s14  }
 0x7c0 PF: > { %s4070_s17 = sld [smem:[#allocation11_spill]]  ;;  %s2381_s26 = sand.u32 1, %s3038_s30  }
 0x7c1   : > { %p4072_p13 = scmp.ge.s32.totalorder %s3050_s12, 2  ;;  %s2382_s22 = scalar_lea.sflag [#allocation4], %s2381_s26 }
 0x7c6   : > { %p4071_p10 = scmp.ne.s32.totalorder %s4070_s17, 0 }
 0x7c8   : > { %p2773_p3 = pnand %p4072_p13, %p4071_p10 }
 0x7ca   : > { %3033 = dma.done.wait (!%p2773_p3), %s2382_s22, 2048  }
 0x7cb   : > { %3035 = vsyncadd (!%p2773_p3), %s2382_s22, 4294965248  ;;  %s4073_s12 = sld [smem:[#allocation12_spill]]  ;;  %s4074_s30 = smov %s3042_s10 }
 0x7cc   : > { %s4075_s10 = smov %s3046_s11  ;;  %s4076_s11 = smov %s3203_s28 }
 0x7d1   : > { %p23_p7 = scmp.ge.s32.totalorder %s4073_s12, 4  }
 0x7d3   :  { %25 = sbr.rel (!%p23_p7) target bundleno = 6 (0x6), region = 105 }
 0x7da   :  { %2387 = vsyncpa [#allocation3], 1 }
 0x7db   :  { %2389 = vsyncpa [#allocation3 + $0x1], 1 }
 0x7dc   :  { %2390 = vsyncpa [#allocation6], 1 }
 0x7dd   :  { %2391 = vsyncpa [#allocation4], 1 }
 0x7de   :  { %2393 = vsyncpa [#allocation4 + $0x1], 1 }

</bundles_post_ra>
